<compile_context>
chip_gen: v6e
topology: v6e:2x2x1
jax: 0.10.0
libtpu: 0.0.40
codegen_flags: <defaults>
</compile_context>

<pallas_src>
import math

import jax
import jax.numpy as jnp
from jax import lax
from jax.experimental import pallas as pl
from jax.experimental.pallas import tpu as pltpu

E_CONST = 2.71828182845      # constant used by the PyTorch module (== e to ~4e-11)

# ---- packed activation row layout (channel-major, (N_ROWS, bp//128, 128)) --
FEAT_ROW = 0      # rows  0..4  : feature = Linear(20,5)(u_emb * i_emb)
U_ROW = 5         # rows  5..9  : u_rating_ratio
I_ROW = 10        # rows 10..14 : i_rating_ratio
N_ROWS = 16       # row  15     : zero padding (sublane alignment)

LANE = 128
CHUNK = 1024      # 8 sublanes x 128 lanes = one vreg per channel per chunk

# ---- packed flat weight layout (f32, SMEM) ---------------------------------
MEAN_W, MEAN_B = 0, 25         # Gumbel.mean_fun : Linear(5,5)
VAR_W, VAR_B = 30, 55          # Gumbel.var_fun  : Linear(5,5)
CONV_W0, CONV_W1, CONV_W2 = 60, 85, 110   # Conv1d(5,5,k=3) taps, (out,in)
CONV_B = 135
MLP1_W, MLP1_B = 140, 165      # Gumbel.mlp1
MLP2_W, MLP2_B = 170, 195      # Gumbel.mlp2
N_PARAMS = 200


def pmf_gumbel_kernel(w_ref, x_ref, out_ref):
    """One batch tile.

    w_ref  : (N_PARAMS,)          f32 SMEM -- all weights/biases, flat.
    x_ref  : (16, tb//128, 128)   f32 VMEM -- channel-major activations.
    out_ref: (tb//128, 128)       f32 VMEM -- per-row score, lane-dense.
    """
    n_chunks = x_ref.shape[1] // 8            # tb // 1024, compile-time const

    w = lambda k: w_ref[k]                    # scalar weight from SMEM

    def dot5(vals, base, o):
        # one output channel of a 5x5 matrix: sum_c W[o,c] * vals[c]
        acc = vals[0] * w(base + 5 * o)
        for c in range(1, 5):
            acc = acc + vals[c] * w(base + 5 * o + c)
        return acc

    def chunk_body(j, carry):
        # 8-sublane (1024-element) chunk -> every per-channel value is exactly
        # one dense (8,128) vreg; total live set stays well under 64 vregs.
        s = pl.multiple_of(j * 8, 8)
        sl = pl.ds(s, 8)

        feat = [x_ref[FEAT_ROW + c, sl, :] for c in range(5)]
        u = [x_ref[U_ROW + c, sl, :] for c in range(5)]
        it = [x_ref[I_ROW + c, sl, :] for c in range(5)]

        # Gumbel-style pdf for both u_rating_ratio and i_rating_ratio,
        # sharing the mean_fun / var_fun scalar weight loads.
        out1, out2 = [], []
        for o in range(5):
            mw = [w(MEAN_W + 5 * o + c) for c in range(5)]
            mb = w(MEAN_B + o)
            vw = [w(VAR_W + 5 * o + c) for c in range(5)]
            vb = w(VAR_B + o)
            r = float(o + 1)                       # rating constant baked in
            for vals, outs in ((u, out1), (it, out2)):
                mean = vals[0] * mw[0]
                v = vals[0] * vw[0]
                for c in range(1, 5):
                    mean = mean + vals[c] * mw[c]
                    v = v + vals[c] * vw[c]
                mean = mean + mb
                v = v + vb
                var = v * v + 0.2
                inv_var = pl.reciprocal(var)       # exact; reused twice
                l1 = jnp.exp((r - mean) * inv_var)   # e**x (LN_E ~ 1) folded
                l2 = jnp.exp(-l1)
                outs.append(inv_var * l1 * l2)

        # Conv1d(5,5,k=3) over the length-3 sequence [out1, out2, feature],
        # then score = sum_o conv[o] * mlp1(u)[o] * mlp2(i)[o]
        score = None
        for o in range(5):
            conv_o = (dot5(out1, CONV_W0, o)
                      + dot5(out2, CONV_W1, o)
                      + dot5(feat, CONV_W2, o)
                      + w(CONV_B + o))
            urr_o = dot5(u, MLP1_W, o) + w(MLP1_B + o)
            irr_o = dot5(it, MLP2_W, o) + w(MLP2_B + o)
            term = conv_o * urr_o * irr_o
            score = term if score is None else score + term

        out_ref[sl, :] = score
        return carry

    lax.fori_loop(0, n_chunks, chunk_body, 0)


def _round_up(x, m):
    return (x + m - 1) // m * m


def pack_weights(p):
    flat = jnp.concatenate([
        p["mean_w"].reshape(-1), p["mean_b"],
        p["var_w"].reshape(-1), p["var_b"],
        p["conv_w"][:, :, 0].reshape(-1),
        p["conv_w"][:, :, 1].reshape(-1),
        p["conv_w"][:, :, 2].reshape(-1),
        p["conv_b"],
        p["mlp1_w"].reshape(-1), p["mlp1_b"],
        p["mlp2_w"].reshape(-1), p["mlp2_b"],
    ]).astype(jnp.float32)
    assert flat.shape[0] == N_PARAMS
    return flat


def pmf_forward(params, uid, iid, u_rating_ratio, i_rating_ratio, *, tb=16384):
    """PMF forward with pdf='Gumbel'. uid/iid: (B,1) int32; ratios: (B,5)."""
    p = params
    B = u_rating_ratio.shape[0]

    # Embedding gathers + the 20->5 Linear stay in XLA: the Linear fuses with
    # the gather/product epilogue and removes ~200 VALU ops/element plus half
    # the packed-activation HBM traffic from the kernel.
    # TODO(synk): the gathers could be pulled in-kernel via scalar-prefetch +
    # pl.Element row blocks if the embedding tables outgrow XLA gathers.
    u_emb = jnp.take(p["u_emb"], uid.reshape(B), axis=0)          # (B, 20)
    i_emb = jnp.take(p["i_emb"], iid.reshape(B), axis=0)          # (B, 20)
    prod = (u_emb * i_emb).astype(jnp.float32)
    feat = prod @ p["lin_w"].T.astype(jnp.float32) + p["lin_b"].astype(jnp.float32)  # (B,5)

    # --- batch tile sizing ---------------------------------------------------
    # Big tile (8K-32K, sweepable) to amortize per-step pipeline overhead;
    # capped so the grid has >=2 steps when possible (v7x has 2 TCs).
    bp0 = _round_up(B, CHUNK)
    tb = max(CHUNK, min(_round_up(tb, CHUNK), bp0))
    if bp0 >= 2 * CHUNK:
        tb = min(tb, _round_up(bp0 // 2, CHUNK))
    bp = _round_up(B, tb)

    # One packed, channel-major activation operand. Reshape to
    # (16, bp//128, 128) so every per-channel slice is a dense 8x128 tile.
    x = jnp.concatenate(
        [feat,
         u_rating_ratio.astype(jnp.float32),
         i_rating_ratio.astype(jnp.float32)], axis=1)              # (B, 15)
    x = jnp.pad(x, ((0, bp - B), (0, N_ROWS - 15)))                # (bp, 16)
    x = x.T.reshape(N_ROWS, bp // LANE, LANE)                      # (16, bp//128, 128)

    wflat = pack_weights(p)                                        # (200,)

    out = pl.pallas_call(
        pmf_gumbel_kernel,
        out_shape=jax.ShapeDtypeStruct((bp // LANE, LANE), jnp.float32),
        grid=(bp // tb,),
        in_specs=[
            # all weights: one flat SMEM operand (scalar loads in-kernel)
            pl.BlockSpec(memory_space=pltpu.MemorySpace.SMEM),
            # activations: (16, tb//128, 128) channel-major batch tile
            pl.BlockSpec((N_ROWS, tb // LANE, LANE), lambda b: (0, b, 0)),
        ],
        # lane-dense score block (batch flattened over sublane x lane)
        out_specs=pl.BlockSpec((tb // LANE, LANE), lambda b: (b, 0)),
        compiler_params=pltpu.CompilerParams(
            dimension_semantics=("parallel",),    # megacore split on v7x
        ),
    )(wflat, x)

    return jnp.squeeze(out.reshape(bp)[:B])        # matches torch .squeeze()


def init_params(key, num_user, num_item):
    """Params mimicking PyTorch defaults (uniform +-1/sqrt(fan_in)).

    NOTE: the PyTorch PMF inits the 20-d embeddings to the constant 0.5;
    random values are used here so the numerical check is non-degenerate.
    """
    ks = jax.random.split(key, 14)

    def lin(kw, kb, fan_in, fan_out):
        bound = 1.0 / math.sqrt(fan_in)
        wt = jax.random.uniform(kw, (fan_out, fan_in), jnp.float32, -bound, bound)
        b = jax.random.uniform(kb, (fan_out,), jnp.float32, -bound, bound)
        return wt, b

    u_emb = 0.5 * jax.random.normal(ks[0], (num_user + 1, 20), jnp.float32)
    i_emb = 0.5 * jax.random.normal(ks[1], (num_item + 1, 20), jnp.float32)

    lin_w, lin_b = lin(ks[2], ks[3], 20, 5)
    mean_w, mean_b = lin(ks[4], ks[5], 5, 5)
    var_w, var_b = lin(ks[6], ks[7], 5, 5)
    mlp1_w, mlp1_b = lin(ks[8], ks[9], 5, 5)
    mlp2_w, mlp2_b = lin(ks[10], ks[11], 5, 5)

    conv_bound = 1.0 / math.sqrt(5 * 3)
    conv_w = jax.random.uniform(ks[12], (5, 5, 3), jnp.float32, -conv_bound, conv_bound)
    conv_b = jax.random.uniform(ks[13], (5,), jnp.float32, -conv_bound, conv_bound)

    return dict(u_emb=u_emb, i_emb=i_emb,
                lin_w=lin_w, lin_b=lin_b,
                mean_w=mean_w, mean_b=mean_b,
                var_w=var_w, var_b=var_b,
                conv_w=conv_w, conv_b=conv_b,
                mlp1_w=mlp1_w, mlp1_b=mlp1_b,
                mlp2_w=mlp2_w, mlp2_b=mlp2_b)


def pmf_reference(params, uid, iid, u_rating_ratio, i_rating_ratio):
    """Pure-JAX reference mirroring the PyTorch PMF (pdf='Gumbel') forward."""
    p = params
    u = jnp.take(p["u_emb"], uid, axis=0)                    # (B,1,20)
    i = jnp.take(p["i_emb"], iid, axis=0)                    # (B,1,20)
    rate = u * i
    feature = rate @ p["lin_w"].T + p["lin_b"]               # (B,1,5)

    rating = jnp.arange(1.0, 6.0, dtype=jnp.float32)

    def lin(x, wt, b):
        return x @ wt.T + b

    def pdf(x):
        mean = lin(x, p["mean_w"], p["mean_b"])
        var = lin(x, p["var_w"], p["var_b"]) ** 2 + 0.2
        l1 = E_CONST ** ((rating - mean) / var)
        l2 = E_CONST ** (-l1)
        return 1.0 / var * l1 * l2

    out1 = pdf(u_rating_ratio)
    out2 = pdf(i_rating_ratio)
    cat = jnp.concatenate([out1[:, None, :], out2[:, None, :], feature], axis=1)  # (B,3,5)
    xc = jnp.transpose(cat, (0, 2, 1))                                            # (B,5,3)
    conv = jnp.einsum("bck,ock->bo", xc, p["conv_w"]) + p["conv_b"]               # (B,5)
    urr = lin(u_rating_ratio, p["mlp1_w"], p["mlp1_b"])
    irr = lin(i_rating_ratio, p["mlp2_w"], p["mlp2_b"])
    return jnp.squeeze(jnp.sum(conv * urr * irr, axis=-1))


if __name__ == "__main__":
    key = jax.random.PRNGKey(0)
    kp, ku, ki, kur, kir = jax.random.split(key, 5)

    num_user, num_item = 11, 13
    B = 4

    params = init_params(kp, num_user, num_item)

    uid = jax.random.randint(ku, (B, 1), 0, num_user + 1, dtype=jnp.int32)
    iid = jax.random.randint(ki, (B, 1), 0, num_item + 1, dtype=jnp.int32)
    u_rating_ratio = jax.random.uniform(kur, (B, 5), dtype=jnp.float32)
    i_rating_ratio = jax.random.uniform(kir, (B, 5), dtype=jnp.float32)

    out = pmf_forward(params, uid, iid, u_rating_ratio, i_rating_ratio)
    out = jax.block_until_ready(out)

    ref = pmf_reference(params, uid, iid, u_rating_ratio, i_rating_ratio)
    assert out.shape == ref.shape, (out.shape, ref.shape)
    assert jnp.allclose(out, ref, atol=1e-5, rtol=1e-4), (out, ref)

    print("KERNEL_OK")
</pallas_src>

<mosaic_0001>
module attributes {stable_mosaic.version = 11 : i64} {
  func.func @pmf_gumbel_kernel(%arg0: i32, %arg1: memref<200xf32, #tpu.memory_space<smem>>, %arg2: memref<16x8x128xf32, #tpu.memory_space<vmem>>, %arg3: memref<8x128xf32, #tpu.memory_space<vmem>>) attributes {dimension_semantics = [#tpu.dimension_semantics<parallel>], iteration_bounds = array<i64: 1>, scalar_prefetch = 0 : i64, scratch_operands = 0 : i64, tpu.core_type = #tpu.core_type<tc>, window_params = [{transform_indices = @transform_0, window_bounds = array<i64: 200>}, {transform_indices = @transform_1, window_bounds = array<i64: 16, 8, 128>}, {transform_indices = @transform_2, window_bounds = array<i64: 8, 128>}]} {
    %c0_i32 = arith.constant 0 : i32
    %c8_i32 = arith.constant 8 : i32
    %0 = arith.muli %c0_i32, %c8_i32 : i32
    %1 = tpu.assume_multiple %0, 8 : i32
    %c0 = arith.constant 0 : index
    %2 = arith.index_cast %1 : i32 to index
    %c0_0 = arith.constant 0 : index
    %3 = vector.load %arg2[%c0, %2, %c0_0] : memref<16x8x128xf32, #tpu.memory_space<vmem>>, vector<1x8x128xf32>
    %4 = vector.shape_cast %3 : vector<1x8x128xf32> to vector<8x128xf32>
    %c1 = arith.constant 1 : index
    %5 = arith.index_cast %1 : i32 to index
    %c0_1 = arith.constant 0 : index
    %6 = vector.load %arg2[%c1, %5, %c0_1] : memref<16x8x128xf32, #tpu.memory_space<vmem>>, vector<1x8x128xf32>
    %7 = vector.shape_cast %6 : vector<1x8x128xf32> to vector<8x128xf32>
    %c2 = arith.constant 2 : index
    %8 = arith.index_cast %1 : i32 to index
    %c0_2 = arith.constant 0 : index
    %9 = vector.load %arg2[%c2, %8, %c0_2] : memref<16x8x128xf32, #tpu.memory_space<vmem>>, vector<1x8x128xf32>
    %10 = vector.shape_cast %9 : vector<1x8x128xf32> to vector<8x128xf32>
    %c3 = arith.constant 3 : index
    %11 = arith.index_cast %1 : i32 to index
    %c0_3 = arith.constant 0 : index
    %12 = vector.load %arg2[%c3, %11, %c0_3] : memref<16x8x128xf32, #tpu.memory_space<vmem>>, vector<1x8x128xf32>
    %13 = vector.shape_cast %12 : vector<1x8x128xf32> to vector<8x128xf32>
    %c4 = arith.constant 4 : index
    %14 = arith.index_cast %1 : i32 to index
    %c0_4 = arith.constant 0 : index
    %15 = vector.load %arg2[%c4, %14, %c0_4] : memref<16x8x128xf32, #tpu.memory_space<vmem>>, vector<1x8x128xf32>
    %16 = vector.shape_cast %15 : vector<1x8x128xf32> to vector<8x128xf32>
    %c5 = arith.constant 5 : index
    %17 = arith.index_cast %1 : i32 to index
    %c0_5 = arith.constant 0 : index
    %18 = vector.load %arg2[%c5, %17, %c0_5] : memref<16x8x128xf32, #tpu.memory_space<vmem>>, vector<1x8x128xf32>
    %19 = vector.shape_cast %18 : vector<1x8x128xf32> to vector<8x128xf32>
    %c6 = arith.constant 6 : index
    %20 = arith.index_cast %1 : i32 to index
    %c0_6 = arith.constant 0 : index
    %21 = vector.load %arg2[%c6, %20, %c0_6] : memref<16x8x128xf32, #tpu.memory_space<vmem>>, vector<1x8x128xf32>
    %22 = vector.shape_cast %21 : vector<1x8x128xf32> to vector<8x128xf32>
    %c7 = arith.constant 7 : index
    %23 = arith.index_cast %1 : i32 to index
    %c0_7 = arith.constant 0 : index
    %24 = vector.load %arg2[%c7, %23, %c0_7] : memref<16x8x128xf32, #tpu.memory_space<vmem>>, vector<1x8x128xf32>
    %25 = vector.shape_cast %24 : vector<1x8x128xf32> to vector<8x128xf32>
    %c8 = arith.constant 8 : index
    %26 = arith.index_cast %1 : i32 to index
    %c0_8 = arith.constant 0 : index
    %27 = vector.load %arg2[%c8, %26, %c0_8] : memref<16x8x128xf32, #tpu.memory_space<vmem>>, vector<1x8x128xf32>
    %28 = vector.shape_cast %27 : vector<1x8x128xf32> to vector<8x128xf32>
    %c9 = arith.constant 9 : index
    %29 = arith.index_cast %1 : i32 to index
    %c0_9 = arith.constant 0 : index
    %30 = vector.load %arg2[%c9, %29, %c0_9] : memref<16x8x128xf32, #tpu.memory_space<vmem>>, vector<1x8x128xf32>
    %31 = vector.shape_cast %30 : vector<1x8x128xf32> to vector<8x128xf32>
    %c10 = arith.constant 10 : index
    %32 = arith.index_cast %1 : i32 to index
    %c0_10 = arith.constant 0 : index
    %33 = vector.load %arg2[%c10, %32, %c0_10] : memref<16x8x128xf32, #tpu.memory_space<vmem>>, vector<1x8x128xf32>
    %34 = vector.shape_cast %33 : vector<1x8x128xf32> to vector<8x128xf32>
    %c11 = arith.constant 11 : index
    %35 = arith.index_cast %1 : i32 to index
    %c0_11 = arith.constant 0 : index
    %36 = vector.load %arg2[%c11, %35, %c0_11] : memref<16x8x128xf32, #tpu.memory_space<vmem>>, vector<1x8x128xf32>
    %37 = vector.shape_cast %36 : vector<1x8x128xf32> to vector<8x128xf32>
    %c12 = arith.constant 12 : index
    %38 = arith.index_cast %1 : i32 to index
    %c0_12 = arith.constant 0 : index
    %39 = vector.load %arg2[%c12, %38, %c0_12] : memref<16x8x128xf32, #tpu.memory_space<vmem>>, vector<1x8x128xf32>
    %40 = vector.shape_cast %39 : vector<1x8x128xf32> to vector<8x128xf32>
    %c13 = arith.constant 13 : index
    %41 = arith.index_cast %1 : i32 to index
    %c0_13 = arith.constant 0 : index
    %42 = vector.load %arg2[%c13, %41, %c0_13] : memref<16x8x128xf32, #tpu.memory_space<vmem>>, vector<1x8x128xf32>
    %43 = vector.shape_cast %42 : vector<1x8x128xf32> to vector<8x128xf32>
    %c14 = arith.constant 14 : index
    %44 = arith.index_cast %1 : i32 to index
    %c0_14 = arith.constant 0 : index
    %45 = vector.load %arg2[%c14, %44, %c0_14] : memref<16x8x128xf32, #tpu.memory_space<vmem>>, vector<1x8x128xf32>
    %46 = vector.shape_cast %45 : vector<1x8x128xf32> to vector<8x128xf32>
    %c0_15 = arith.constant 0 : index
    %47 = memref.load %arg1[%c0_15] : memref<200xf32, #tpu.memory_space<smem>>
    %c1_16 = arith.constant 1 : index
    %48 = memref.load %arg1[%c1_16] : memref<200xf32, #tpu.memory_space<smem>>
    %c2_17 = arith.constant 2 : index
    %49 = memref.load %arg1[%c2_17] : memref<200xf32, #tpu.memory_space<smem>>
    %c3_18 = arith.constant 3 : index
    %50 = memref.load %arg1[%c3_18] : memref<200xf32, #tpu.memory_space<smem>>
    %c4_19 = arith.constant 4 : index
    %51 = memref.load %arg1[%c4_19] : memref<200xf32, #tpu.memory_space<smem>>
    %c25 = arith.constant 25 : index
    %52 = memref.load %arg1[%c25] : memref<200xf32, #tpu.memory_space<smem>>
    %c30 = arith.constant 30 : index
    %53 = memref.load %arg1[%c30] : memref<200xf32, #tpu.memory_space<smem>>
    %c31 = arith.constant 31 : index
    %54 = memref.load %arg1[%c31] : memref<200xf32, #tpu.memory_space<smem>>
    %c32 = arith.constant 32 : index
    %55 = memref.load %arg1[%c32] : memref<200xf32, #tpu.memory_space<smem>>
    %c33 = arith.constant 33 : index
    %56 = memref.load %arg1[%c33] : memref<200xf32, #tpu.memory_space<smem>>
    %c34 = arith.constant 34 : index
    %57 = memref.load %arg1[%c34] : memref<200xf32, #tpu.memory_space<smem>>
    %c55 = arith.constant 55 : index
    %58 = memref.load %arg1[%c55] : memref<200xf32, #tpu.memory_space<smem>>
    %59 = vector.broadcast %47 : f32 to vector<8x128xf32>
    %60 = arith.mulf %19, %59 : vector<8x128xf32>
    %61 = vector.broadcast %53 : f32 to vector<8x128xf32>
    %62 = arith.mulf %19, %61 : vector<8x128xf32>
    %63 = vector.broadcast %48 : f32 to vector<8x128xf32>
    %64 = arith.mulf %22, %63 : vector<8x128xf32>
    %65 = arith.addf %60, %64 : vector<8x128xf32>
    %66 = vector.broadcast %54 : f32 to vector<8x128xf32>
    %67 = arith.mulf %22, %66 : vector<8x128xf32>
    %68 = arith.addf %62, %67 : vector<8x128xf32>
    %69 = vector.broadcast %49 : f32 to vector<8x128xf32>
    %70 = arith.mulf %25, %69 : vector<8x128xf32>
    %71 = arith.addf %65, %70 : vector<8x128xf32>
    %72 = vector.broadcast %55 : f32 to vector<8x128xf32>
    %73 = arith.mulf %25, %72 : vector<8x128xf32>
    %74 = arith.addf %68, %73 : vector<8x128xf32>
    %75 = vector.broadcast %50 : f32 to vector<8x128xf32>
    %76 = arith.mulf %28, %75 : vector<8x128xf32>
    %77 = arith.addf %71, %76 : vector<8x128xf32>
    %78 = vector.broadcast %56 : f32 to vector<8x128xf32>
    %79 = arith.mulf %28, %78 : vector<8x128xf32>
    %80 = arith.addf %74, %79 : vector<8x128xf32>
    %81 = vector.broadcast %51 : f32 to vector<8x128xf32>
    %82 = arith.mulf %31, %81 : vector<8x128xf32>
    %83 = arith.addf %77, %82 : vector<8x128xf32>
    %84 = vector.broadcast %57 : f32 to vector<8x128xf32>
    %85 = arith.mulf %31, %84 : vector<8x128xf32>
    %86 = arith.addf %80, %85 : vector<8x128xf32>
    %87 = vector.broadcast %52 : f32 to vector<8x128xf32>
    %88 = arith.addf %83, %87 : vector<8x128xf32>
    %89 = vector.broadcast %58 : f32 to vector<8x128xf32>
    %90 = arith.addf %86, %89 : vector<8x128xf32>
    %91 = arith.mulf %90, %90 : vector<8x128xf32>
    %cst = arith.constant 2.000000e-01 : f32
    %92 = vector.broadcast %cst : f32 to vector<8x128xf32>
    %93 = arith.addf %91, %92 : vector<8x128xf32>
    %94 = tpu.reciprocal %93 : vector<8x128xf32> -> vector<8x128xf32>
    %cst_20 = arith.constant 1.000000e+00 : f32
    %95 = vector.broadcast %cst_20 : f32 to vector<8x128xf32>
    %96 = arith.subf %95, %88 : vector<8x128xf32>
    %97 = arith.mulf %96, %94 : vector<8x128xf32>
    %98 = math.exp %97 : vector<8x128xf32>
    %cst_21 = arith.constant 0.000000e+00 : f32
    %99 = vector.broadcast %cst_21 : f32 to vector<8x128xf32>
    %100 = arith.subf %99, %98 : vector<8x128xf32>
    %101 = math.exp %100 : vector<8x128xf32>
    %102 = arith.mulf %94, %98 : vector<8x128xf32>
    %103 = arith.mulf %102, %101 : vector<8x128xf32>
    %104 = vector.broadcast %47 : f32 to vector<8x128xf32>
    %105 = arith.mulf %34, %104 : vector<8x128xf32>
    %106 = vector.broadcast %53 : f32 to vector<8x128xf32>
    %107 = arith.mulf %34, %106 : vector<8x128xf32>
    %108 = vector.broadcast %48 : f32 to vector<8x128xf32>
    %109 = arith.mulf %37, %108 : vector<8x128xf32>
    %110 = arith.addf %105, %109 : vector<8x128xf32>
    %111 = vector.broadcast %54 : f32 to vector<8x128xf32>
    %112 = arith.mulf %37, %111 : vector<8x128xf32>
    %113 = arith.addf %107, %112 : vector<8x128xf32>
    %114 = vector.broadcast %49 : f32 to vector<8x128xf32>
    %115 = arith.mulf %40, %114 : vector<8x128xf32>
    %116 = arith.addf %110, %115 : vector<8x128xf32>
    %117 = vector.broadcast %55 : f32 to vector<8x128xf32>
    %118 = arith.mulf %40, %117 : vector<8x128xf32>
    %119 = arith.addf %113, %118 : vector<8x128xf32>
    %120 = vector.broadcast %50 : f32 to vector<8x128xf32>
    %121 = arith.mulf %43, %120 : vector<8x128xf32>
    %122 = arith.addf %116, %121 : vector<8x128xf32>
    %123 = vector.broadcast %56 : f32 to vector<8x128xf32>
    %124 = arith.mulf %43, %123 : vector<8x128xf32>
    %125 = arith.addf %119, %124 : vector<8x128xf32>
    %126 = vector.broadcast %51 : f32 to vector<8x128xf32>
    %127 = arith.mulf %46, %126 : vector<8x128xf32>
    %128 = arith.addf %122, %127 : vector<8x128xf32>
    %129 = vector.broadcast %57 : f32 to vector<8x128xf32>
    %130 = arith.mulf %46, %129 : vector<8x128xf32>
    %131 = arith.addf %125, %130 : vector<8x128xf32>
    %132 = vector.broadcast %52 : f32 to vector<8x128xf32>
    %133 = arith.addf %128, %132 : vector<8x128xf32>
    %134 = vector.broadcast %58 : f32 to vector<8x128xf32>
    %135 = arith.addf %131, %134 : vector<8x128xf32>
    %136 = arith.mulf %135, %135 : vector<8x128xf32>
    %cst_22 = arith.constant 2.000000e-01 : f32
    %137 = vector.broadcast %cst_22 : f32 to vector<8x128xf32>
    %138 = arith.addf %136, %137 : vector<8x128xf32>
    %139 = tpu.reciprocal %138 : vector<8x128xf32> -> vector<8x128xf32>
    %cst_23 = arith.constant 1.000000e+00 : f32
    %140 = vector.broadcast %cst_23 : f32 to vector<8x128xf32>
    %141 = arith.subf %140, %133 : vector<8x128xf32>
    %142 = arith.mulf %141, %139 : vector<8x128xf32>
    %143 = math.exp %142 : vector<8x128xf32>
    %cst_24 = arith.constant 0.000000e+00 : f32
    %144 = vector.broadcast %cst_24 : f32 to vector<8x128xf32>
    %145 = arith.subf %144, %143 : vector<8x128xf32>
    %146 = math.exp %145 : vector<8x128xf32>
    %147 = arith.mulf %139, %143 : vector<8x128xf32>
    %148 = arith.mulf %147, %146 : vector<8x128xf32>
    %c5_25 = arith.constant 5 : index
    %149 = memref.load %arg1[%c5_25] : memref<200xf32, #tpu.memory_space<smem>>
    %c6_26 = arith.constant 6 : index
    %150 = memref.load %arg1[%c6_26] : memref<200xf32, #tpu.memory_space<smem>>
    %c7_27 = arith.constant 7 : index
    %151 = memref.load %arg1[%c7_27] : memref<200xf32, #tpu.memory_space<smem>>
    %c8_28 = arith.constant 8 : index
    %152 = memref.load %arg1[%c8_28] : memref<200xf32, #tpu.memory_space<smem>>
    %c9_29 = arith.constant 9 : index
    %153 = memref.load %arg1[%c9_29] : memref<200xf32, #tpu.memory_space<smem>>
    %c26 = arith.constant 26 : index
    %154 = memref.load %arg1[%c26] : memref<200xf32, #tpu.memory_space<smem>>
    %c35 = arith.constant 35 : index
    %155 = memref.load %arg1[%c35] : memref<200xf32, #tpu.memory_space<smem>>
    %c36 = arith.constant 36 : index
    %156 = memref.load %arg1[%c36] : memref<200xf32, #tpu.memory_space<smem>>
    %c37 = arith.constant 37 : index
    %157 = memref.load %arg1[%c37] : memref<200xf32, #tpu.memory_space<smem>>
    %c38 = arith.constant 38 : index
    %158 = memref.load %arg1[%c38] : memref<200xf32, #tpu.memory_space<smem>>
    %c39 = arith.constant 39 : index
    %159 = memref.load %arg1[%c39] : memref<200xf32, #tpu.memory_space<smem>>
    %c56 = arith.constant 56 : index
    %160 = memref.load %arg1[%c56] : memref<200xf32, #tpu.memory_space<smem>>
    %161 = vector.broadcast %149 : f32 to vector<8x128xf32>
    %162 = arith.mulf %19, %161 : vector<8x128xf32>
    %163 = vector.broadcast %155 : f32 to vector<8x128xf32>
    %164 = arith.mulf %19, %163 : vector<8x128xf32>
    %165 = vector.broadcast %150 : f32 to vector<8x128xf32>
    %166 = arith.mulf %22, %165 : vector<8x128xf32>
    %167 = arith.addf %162, %166 : vector<8x128xf32>
    %168 = vector.broadcast %156 : f32 to vector<8x128xf32>
    %169 = arith.mulf %22, %168 : vector<8x128xf32>
    %170 = arith.addf %164, %169 : vector<8x128xf32>
    %171 = vector.broadcast %151 : f32 to vector<8x128xf32>
    %172 = arith.mulf %25, %171 : vector<8x128xf32>
    %173 = arith.addf %167, %172 : vector<8x128xf32>
    %174 = vector.broadcast %157 : f32 to vector<8x128xf32>
    %175 = arith.mulf %25, %174 : vector<8x128xf32>
    %176 = arith.addf %170, %175 : vector<8x128xf32>
    %177 = vector.broadcast %152 : f32 to vector<8x128xf32>
    %178 = arith.mulf %28, %177 : vector<8x128xf32>
    %179 = arith.addf %173, %178 : vector<8x128xf32>
    %180 = vector.broadcast %158 : f32 to vector<8x128xf32>
    %181 = arith.mulf %28, %180 : vector<8x128xf32>
    %182 = arith.addf %176, %181 : vector<8x128xf32>
    %183 = vector.broadcast %153 : f32 to vector<8x128xf32>
    %184 = arith.mulf %31, %183 : vector<8x128xf32>
    %185 = arith.addf %179, %184 : vector<8x128xf32>
    %186 = vector.broadcast %159 : f32 to vector<8x128xf32>
    %187 = arith.mulf %31, %186 : vector<8x128xf32>
    %188 = arith.addf %182, %187 : vector<8x128xf32>
    %189 = vector.broadcast %154 : f32 to vector<8x128xf32>
    %190 = arith.addf %185, %189 : vector<8x128xf32>
    %191 = vector.broadcast %160 : f32 to vector<8x128xf32>
    %192 = arith.addf %188, %191 : vector<8x128xf32>
    %193 = arith.mulf %192, %192 : vector<8x128xf32>
    %cst_30 = arith.constant 2.000000e-01 : f32
    %194 = vector.broadcast %cst_30 : f32 to vector<8x128xf32>
    %195 = arith.addf %193, %194 : vector<8x128xf32>
    %196 = tpu.reciprocal %195 : vector<8x128xf32> -> vector<8x128xf32>
    %cst_31 = arith.constant 2.000000e+00 : f32
    %197 = vector.broadcast %cst_31 : f32 to vector<8x128xf32>
    %198 = arith.subf %197, %190 : vector<8x128xf32>
    %199 = arith.mulf %198, %196 : vector<8x128xf32>
    %200 = math.exp %199 : vector<8x128xf32>
    %cst_32 = arith.constant 0.000000e+00 : f32
    %201 = vector.broadcast %cst_32 : f32 to vector<8x128xf32>
    %202 = arith.subf %201, %200 : vector<8x128xf32>
    %203 = math.exp %202 : vector<8x128xf32>
    %204 = arith.mulf %196, %200 : vector<8x128xf32>
    %205 = arith.mulf %204, %203 : vector<8x128xf32>
    %206 = vector.broadcast %149 : f32 to vector<8x128xf32>
    %207 = arith.mulf %34, %206 : vector<8x128xf32>
    %208 = vector.broadcast %155 : f32 to vector<8x128xf32>
    %209 = arith.mulf %34, %208 : vector<8x128xf32>
    %210 = vector.broadcast %150 : f32 to vector<8x128xf32>
    %211 = arith.mulf %37, %210 : vector<8x128xf32>
    %212 = arith.addf %207, %211 : vector<8x128xf32>
    %213 = vector.broadcast %156 : f32 to vector<8x128xf32>
    %214 = arith.mulf %37, %213 : vector<8x128xf32>
    %215 = arith.addf %209, %214 : vector<8x128xf32>
    %216 = vector.broadcast %151 : f32 to vector<8x128xf32>
    %217 = arith.mulf %40, %216 : vector<8x128xf32>
    %218 = arith.addf %212, %217 : vector<8x128xf32>
    %219 = vector.broadcast %157 : f32 to vector<8x128xf32>
    %220 = arith.mulf %40, %219 : vector<8x128xf32>
    %221 = arith.addf %215, %220 : vector<8x128xf32>
    %222 = vector.broadcast %152 : f32 to vector<8x128xf32>
    %223 = arith.mulf %43, %222 : vector<8x128xf32>
    %224 = arith.addf %218, %223 : vector<8x128xf32>
    %225 = vector.broadcast %158 : f32 to vector<8x128xf32>
    %226 = arith.mulf %43, %225 : vector<8x128xf32>
    %227 = arith.addf %221, %226 : vector<8x128xf32>
    %228 = vector.broadcast %153 : f32 to vector<8x128xf32>
    %229 = arith.mulf %46, %228 : vector<8x128xf32>
    %230 = arith.addf %224, %229 : vector<8x128xf32>
    %231 = vector.broadcast %159 : f32 to vector<8x128xf32>
    %232 = arith.mulf %46, %231 : vector<8x128xf32>
    %233 = arith.addf %227, %232 : vector<8x128xf32>
    %234 = vector.broadcast %154 : f32 to vector<8x128xf32>
    %235 = arith.addf %230, %234 : vector<8x128xf32>
    %236 = vector.broadcast %160 : f32 to vector<8x128xf32>
    %237 = arith.addf %233, %236 : vector<8x128xf32>
    %238 = arith.mulf %237, %237 : vector<8x128xf32>
    %cst_33 = arith.constant 2.000000e-01 : f32
    %239 = vector.broadcast %cst_33 : f32 to vector<8x128xf32>
    %240 = arith.addf %238, %239 : vector<8x128xf32>
    %241 = tpu.reciprocal %240 : vector<8x128xf32> -> vector<8x128xf32>
    %cst_34 = arith.constant 2.000000e+00 : f32
    %242 = vector.broadcast %cst_34 : f32 to vector<8x128xf32>
    %243 = arith.subf %242, %235 : vector<8x128xf32>
    %244 = arith.mulf %243, %241 : vector<8x128xf32>
    %245 = math.exp %244 : vector<8x128xf32>
    %cst_35 = arith.constant 0.000000e+00 : f32
    %246 = vector.broadcast %cst_35 : f32 to vector<8x128xf32>
    %247 = arith.subf %246, %245 : vector<8x128xf32>
    %248 = math.exp %247 : vector<8x128xf32>
    %249 = arith.mulf %241, %245 : vector<8x128xf32>
    %250 = arith.mulf %249, %248 : vector<8x128xf32>
    %c10_36 = arith.constant 10 : index
    %251 = memref.load %arg1[%c10_36] : memref<200xf32, #tpu.memory_space<smem>>
    %c11_37 = arith.constant 11 : index
    %252 = memref.load %arg1[%c11_37] : memref<200xf32, #tpu.memory_space<smem>>
    %c12_38 = arith.constant 12 : index
    %253 = memref.load %arg1[%c12_38] : memref<200xf32, #tpu.memory_space<smem>>
    %c13_39 = arith.constant 13 : index
    %254 = memref.load %arg1[%c13_39] : memref<200xf32, #tpu.memory_space<smem>>
    %c14_40 = arith.constant 14 : index
    %255 = memref.load %arg1[%c14_40] : memref<200xf32, #tpu.memory_space<smem>>
    %c27 = arith.constant 27 : index
    %256 = memref.load %arg1[%c27] : memref<200xf32, #tpu.memory_space<smem>>
    %c40 = arith.constant 40 : index
    %257 = memref.load %arg1[%c40] : memref<200xf32, #tpu.memory_space<smem>>
    %c41 = arith.constant 41 : index
    %258 = memref.load %arg1[%c41] : memref<200xf32, #tpu.memory_space<smem>>
    %c42 = arith.constant 42 : index
    %259 = memref.load %arg1[%c42] : memref<200xf32, #tpu.memory_space<smem>>
    %c43 = arith.constant 43 : index
    %260 = memref.load %arg1[%c43] : memref<200xf32, #tpu.memory_space<smem>>
    %c44 = arith.constant 44 : index
    %261 = memref.load %arg1[%c44] : memref<200xf32, #tpu.memory_space<smem>>
    %c57 = arith.constant 57 : index
    %262 = memref.load %arg1[%c57] : memref<200xf32, #tpu.memory_space<smem>>
    %263 = vector.broadcast %251 : f32 to vector<8x128xf32>
    %264 = arith.mulf %19, %263 : vector<8x128xf32>
    %265 = vector.broadcast %257 : f32 to vector<8x128xf32>
    %266 = arith.mulf %19, %265 : vector<8x128xf32>
    %267 = vector.broadcast %252 : f32 to vector<8x128xf32>
    %268 = arith.mulf %22, %267 : vector<8x128xf32>
    %269 = arith.addf %264, %268 : vector<8x128xf32>
    %270 = vector.broadcast %258 : f32 to vector<8x128xf32>
    %271 = arith.mulf %22, %270 : vector<8x128xf32>
    %272 = arith.addf %266, %271 : vector<8x128xf32>
    %273 = vector.broadcast %253 : f32 to vector<8x128xf32>
    %274 = arith.mulf %25, %273 : vector<8x128xf32>
    %275 = arith.addf %269, %274 : vector<8x128xf32>
    %276 = vector.broadcast %259 : f32 to vector<8x128xf32>
    %277 = arith.mulf %25, %276 : vector<8x128xf32>
    %278 = arith.addf %272, %277 : vector<8x128xf32>
    %279 = vector.broadcast %254 : f32 to vector<8x128xf32>
    %280 = arith.mulf %28, %279 : vector<8x128xf32>
    %281 = arith.addf %275, %280 : vector<8x128xf32>
    %282 = vector.broadcast %260 : f32 to vector<8x128xf32>
    %283 = arith.mulf %28, %282 : vector<8x128xf32>
    %284 = arith.addf %278, %283 : vector<8x128xf32>
    %285 = vector.broadcast %255 : f32 to vector<8x128xf32>
    %286 = arith.mulf %31, %285 : vector<8x128xf32>
    %287 = arith.addf %281, %286 : vector<8x128xf32>
    %288 = vector.broadcast %261 : f32 to vector<8x128xf32>
    %289 = arith.mulf %31, %288 : vector<8x128xf32>
    %290 = arith.addf %284, %289 : vector<8x128xf32>
    %291 = vector.broadcast %256 : f32 to vector<8x128xf32>
    %292 = arith.addf %287, %291 : vector<8x128xf32>
    %293 = vector.broadcast %262 : f32 to vector<8x128xf32>
    %294 = arith.addf %290, %293 : vector<8x128xf32>
    %295 = arith.mulf %294, %294 : vector<8x128xf32>
    %cst_41 = arith.constant 2.000000e-01 : f32
    %296 = vector.broadcast %cst_41 : f32 to vector<8x128xf32>
    %297 = arith.addf %295, %296 : vector<8x128xf32>
    %298 = tpu.reciprocal %297 : vector<8x128xf32> -> vector<8x128xf32>
    %cst_42 = arith.constant 3.000000e+00 : f32
    %299 = vector.broadcast %cst_42 : f32 to vector<8x128xf32>
    %300 = arith.subf %299, %292 : vector<8x128xf32>
    %301 = arith.mulf %300, %298 : vector<8x128xf32>
    %302 = math.exp %301 : vector<8x128xf32>
    %cst_43 = arith.constant 0.000000e+00 : f32
    %303 = vector.broadcast %cst_43 : f32 to vector<8x128xf32>
    %304 = arith.subf %303, %302 : vector<8x128xf32>
    %305 = math.exp %304 : vector<8x128xf32>
    %306 = arith.mulf %298, %302 : vector<8x128xf32>
    %307 = arith.mulf %306, %305 : vector<8x128xf32>
    %308 = vector.broadcast %251 : f32 to vector<8x128xf32>
    %309 = arith.mulf %34, %308 : vector<8x128xf32>
    %310 = vector.broadcast %257 : f32 to vector<8x128xf32>
    %311 = arith.mulf %34, %310 : vector<8x128xf32>
    %312 = vector.broadcast %252 : f32 to vector<8x128xf32>
    %313 = arith.mulf %37, %312 : vector<8x128xf32>
    %314 = arith.addf %309, %313 : vector<8x128xf32>
    %315 = vector.broadcast %258 : f32 to vector<8x128xf32>
    %316 = arith.mulf %37, %315 : vector<8x128xf32>
    %317 = arith.addf %311, %316 : vector<8x128xf32>
    %318 = vector.broadcast %253 : f32 to vector<8x128xf32>
    %319 = arith.mulf %40, %318 : vector<8x128xf32>
    %320 = arith.addf %314, %319 : vector<8x128xf32>
    %321 = vector.broadcast %259 : f32 to vector<8x128xf32>
    %322 = arith.mulf %40, %321 : vector<8x128xf32>
    %323 = arith.addf %317, %322 : vector<8x128xf32>
    %324 = vector.broadcast %254 : f32 to vector<8x128xf32>
    %325 = arith.mulf %43, %324 : vector<8x128xf32>
    %326 = arith.addf %320, %325 : vector<8x128xf32>
    %327 = vector.broadcast %260 : f32 to vector<8x128xf32>
    %328 = arith.mulf %43, %327 : vector<8x128xf32>
    %329 = arith.addf %323, %328 : vector<8x128xf32>
    %330 = vector.broadcast %255 : f32 to vector<8x128xf32>
    %331 = arith.mulf %46, %330 : vector<8x128xf32>
    %332 = arith.addf %326, %331 : vector<8x128xf32>
    %333 = vector.broadcast %261 : f32 to vector<8x128xf32>
    %334 = arith.mulf %46, %333 : vector<8x128xf32>
    %335 = arith.addf %329, %334 : vector<8x128xf32>
    %336 = vector.broadcast %256 : f32 to vector<8x128xf32>
    %337 = arith.addf %332, %336 : vector<8x128xf32>
    %338 = vector.broadcast %262 : f32 to vector<8x128xf32>
    %339 = arith.addf %335, %338 : vector<8x128xf32>
    %340 = arith.mulf %339, %339 : vector<8x128xf32>
    %cst_44 = arith.constant 2.000000e-01 : f32
    %341 = vector.broadcast %cst_44 : f32 to vector<8x128xf32>
    %342 = arith.addf %340, %341 : vector<8x128xf32>
    %343 = tpu.reciprocal %342 : vector<8x128xf32> -> vector<8x128xf32>
    %cst_45 = arith.constant 3.000000e+00 : f32
    %344 = vector.broadcast %cst_45 : f32 to vector<8x128xf32>
    %345 = arith.subf %344, %337 : vector<8x128xf32>
    %346 = arith.mulf %345, %343 : vector<8x128xf32>
    %347 = math.exp %346 : vector<8x128xf32>
    %cst_46 = arith.constant 0.000000e+00 : f32
    %348 = vector.broadcast %cst_46 : f32 to vector<8x128xf32>
    %349 = arith.subf %348, %347 : vector<8x128xf32>
    %350 = math.exp %349 : vector<8x128xf32>
    %351 = arith.mulf %343, %347 : vector<8x128xf32>
    %352 = arith.mulf %351, %350 : vector<8x128xf32>
    %c15 = arith.constant 15 : index
    %353 = memref.load %arg1[%c15] : memref<200xf32, #tpu.memory_space<smem>>
    %c16 = arith.constant 16 : index
    %354 = memref.load %arg1[%c16] : memref<200xf32, #tpu.memory_space<smem>>
    %c17 = arith.constant 17 : index
    %355 = memref.load %arg1[%c17] : memref<200xf32, #tpu.memory_space<smem>>
    %c18 = arith.constant 18 : index
    %356 = memref.load %arg1[%c18] : memref<200xf32, #tpu.memory_space<smem>>
    %c19 = arith.constant 19 : index
    %357 = memref.load %arg1[%c19] : memref<200xf32, #tpu.memory_space<smem>>
    %c28 = arith.constant 28 : index
    %358 = memref.load %arg1[%c28] : memref<200xf32, #tpu.memory_space<smem>>
    %c45 = arith.constant 45 : index
    %359 = memref.load %arg1[%c45] : memref<200xf32, #tpu.memory_space<smem>>
    %c46 = arith.constant 46 : index
    %360 = memref.load %arg1[%c46] : memref<200xf32, #tpu.memory_space<smem>>
    %c47 = arith.constant 47 : index
    %361 = memref.load %arg1[%c47] : memref<200xf32, #tpu.memory_space<smem>>
    %c48 = arith.constant 48 : index
    %362 = memref.load %arg1[%c48] : memref<200xf32, #tpu.memory_space<smem>>
    %c49 = arith.constant 49 : index
    %363 = memref.load %arg1[%c49] : memref<200xf32, #tpu.memory_space<smem>>
    %c58 = arith.constant 58 : index
    %364 = memref.load %arg1[%c58] : memref<200xf32, #tpu.memory_space<smem>>
    %365 = vector.broadcast %353 : f32 to vector<8x128xf32>
    %366 = arith.mulf %19, %365 : vector<8x128xf32>
    %367 = vector.broadcast %359 : f32 to vector<8x128xf32>
    %368 = arith.mulf %19, %367 : vector<8x128xf32>
    %369 = vector.broadcast %354 : f32 to vector<8x128xf32>
    %370 = arith.mulf %22, %369 : vector<8x128xf32>
    %371 = arith.addf %366, %370 : vector<8x128xf32>
    %372 = vector.broadcast %360 : f32 to vector<8x128xf32>
    %373 = arith.mulf %22, %372 : vector<8x128xf32>
    %374 = arith.addf %368, %373 : vector<8x128xf32>
    %375 = vector.broadcast %355 : f32 to vector<8x128xf32>
    %376 = arith.mulf %25, %375 : vector<8x128xf32>
    %377 = arith.addf %371, %376 : vector<8x128xf32>
    %378 = vector.broadcast %361 : f32 to vector<8x128xf32>
    %379 = arith.mulf %25, %378 : vector<8x128xf32>
    %380 = arith.addf %374, %379 : vector<8x128xf32>
    %381 = vector.broadcast %356 : f32 to vector<8x128xf32>
    %382 = arith.mulf %28, %381 : vector<8x128xf32>
    %383 = arith.addf %377, %382 : vector<8x128xf32>
    %384 = vector.broadcast %362 : f32 to vector<8x128xf32>
    %385 = arith.mulf %28, %384 : vector<8x128xf32>
    %386 = arith.addf %380, %385 : vector<8x128xf32>
    %387 = vector.broadcast %357 : f32 to vector<8x128xf32>
    %388 = arith.mulf %31, %387 : vector<8x128xf32>
    %389 = arith.addf %383, %388 : vector<8x128xf32>
    %390 = vector.broadcast %363 : f32 to vector<8x128xf32>
    %391 = arith.mulf %31, %390 : vector<8x128xf32>
    %392 = arith.addf %386, %391 : vector<8x128xf32>
    %393 = vector.broadcast %358 : f32 to vector<8x128xf32>
    %394 = arith.addf %389, %393 : vector<8x128xf32>
    %395 = vector.broadcast %364 : f32 to vector<8x128xf32>
    %396 = arith.addf %392, %395 : vector<8x128xf32>
    %397 = arith.mulf %396, %396 : vector<8x128xf32>
    %cst_47 = arith.constant 2.000000e-01 : f32
    %398 = vector.broadcast %cst_47 : f32 to vector<8x128xf32>
    %399 = arith.addf %397, %398 : vector<8x128xf32>
    %400 = tpu.reciprocal %399 : vector<8x128xf32> -> vector<8x128xf32>
    %cst_48 = arith.constant 4.000000e+00 : f32
    %401 = vector.broadcast %cst_48 : f32 to vector<8x128xf32>
    %402 = arith.subf %401, %394 : vector<8x128xf32>
    %403 = arith.mulf %402, %400 : vector<8x128xf32>
    %404 = math.exp %403 : vector<8x128xf32>
    %cst_49 = arith.constant 0.000000e+00 : f32
    %405 = vector.broadcast %cst_49 : f32 to vector<8x128xf32>
    %406 = arith.subf %405, %404 : vector<8x128xf32>
    %407 = math.exp %406 : vector<8x128xf32>
    %408 = arith.mulf %400, %404 : vector<8x128xf32>
    %409 = arith.mulf %408, %407 : vector<8x128xf32>
    %410 = vector.broadcast %353 : f32 to vector<8x128xf32>
    %411 = arith.mulf %34, %410 : vector<8x128xf32>
    %412 = vector.broadcast %359 : f32 to vector<8x128xf32>
    %413 = arith.mulf %34, %412 : vector<8x128xf32>
    %414 = vector.broadcast %354 : f32 to vector<8x128xf32>
    %415 = arith.mulf %37, %414 : vector<8x128xf32>
    %416 = arith.addf %411, %415 : vector<8x128xf32>
    %417 = vector.broadcast %360 : f32 to vector<8x128xf32>
    %418 = arith.mulf %37, %417 : vector<8x128xf32>
    %419 = arith.addf %413, %418 : vector<8x128xf32>
    %420 = vector.broadcast %355 : f32 to vector<8x128xf32>
    %421 = arith.mulf %40, %420 : vector<8x128xf32>
    %422 = arith.addf %416, %421 : vector<8x128xf32>
    %423 = vector.broadcast %361 : f32 to vector<8x128xf32>
    %424 = arith.mulf %40, %423 : vector<8x128xf32>
    %425 = arith.addf %419, %424 : vector<8x128xf32>
    %426 = vector.broadcast %356 : f32 to vector<8x128xf32>
    %427 = arith.mulf %43, %426 : vector<8x128xf32>
    %428 = arith.addf %422, %427 : vector<8x128xf32>
    %429 = vector.broadcast %362 : f32 to vector<8x128xf32>
    %430 = arith.mulf %43, %429 : vector<8x128xf32>
    %431 = arith.addf %425, %430 : vector<8x128xf32>
    %432 = vector.broadcast %357 : f32 to vector<8x128xf32>
    %433 = arith.mulf %46, %432 : vector<8x128xf32>
    %434 = arith.addf %428, %433 : vector<8x128xf32>
    %435 = vector.broadcast %363 : f32 to vector<8x128xf32>
    %436 = arith.mulf %46, %435 : vector<8x128xf32>
    %437 = arith.addf %431, %436 : vector<8x128xf32>
    %438 = vector.broadcast %358 : f32 to vector<8x128xf32>
    %439 = arith.addf %434, %438 : vector<8x128xf32>
    %440 = vector.broadcast %364 : f32 to vector<8x128xf32>
    %441 = arith.addf %437, %440 : vector<8x128xf32>
    %442 = arith.mulf %441, %441 : vector<8x128xf32>
    %cst_50 = arith.constant 2.000000e-01 : f32
    %443 = vector.broadcast %cst_50 : f32 to vector<8x128xf32>
    %444 = arith.addf %442, %443 : vector<8x128xf32>
    %445 = tpu.reciprocal %444 : vector<8x128xf32> -> vector<8x128xf32>
    %cst_51 = arith.constant 4.000000e+00 : f32
    %446 = vector.broadcast %cst_51 : f32 to vector<8x128xf32>
    %447 = arith.subf %446, %439 : vector<8x128xf32>
    %448 = arith.mulf %447, %445 : vector<8x128xf32>
    %449 = math.exp %448 : vector<8x128xf32>
    %cst_52 = arith.constant 0.000000e+00 : f32
    %450 = vector.broadcast %cst_52 : f32 to vector<8x128xf32>
    %451 = arith.subf %450, %449 : vector<8x128xf32>
    %452 = math.exp %451 : vector<8x128xf32>
    %453 = arith.mulf %445, %449 : vector<8x128xf32>
    %454 = arith.mulf %453, %452 : vector<8x128xf32>
    %c20 = arith.constant 20 : index
    %455 = memref.load %arg1[%c20] : memref<200xf32, #tpu.memory_space<smem>>
    %c21 = arith.constant 21 : index
    %456 = memref.load %arg1[%c21] : memref<200xf32, #tpu.memory_space<smem>>
    %c22 = arith.constant 22 : index
    %457 = memref.load %arg1[%c22] : memref<200xf32, #tpu.memory_space<smem>>
    %c23 = arith.constant 23 : index
    %458 = memref.load %arg1[%c23] : memref<200xf32, #tpu.memory_space<smem>>
    %c24 = arith.constant 24 : index
    %459 = memref.load %arg1[%c24] : memref<200xf32, #tpu.memory_space<smem>>
    %c29 = arith.constant 29 : index
    %460 = memref.load %arg1[%c29] : memref<200xf32, #tpu.memory_space<smem>>
    %c50 = arith.constant 50 : index
    %461 = memref.load %arg1[%c50] : memref<200xf32, #tpu.memory_space<smem>>
    %c51 = arith.constant 51 : index
    %462 = memref.load %arg1[%c51] : memref<200xf32, #tpu.memory_space<smem>>
    %c52 = arith.constant 52 : index
    %463 = memref.load %arg1[%c52] : memref<200xf32, #tpu.memory_space<smem>>
    %c53 = arith.constant 53 : index
    %464 = memref.load %arg1[%c53] : memref<200xf32, #tpu.memory_space<smem>>
    %c54 = arith.constant 54 : index
    %465 = memref.load %arg1[%c54] : memref<200xf32, #tpu.memory_space<smem>>
    %c59 = arith.constant 59 : index
    %466 = memref.load %arg1[%c59] : memref<200xf32, #tpu.memory_space<smem>>
    %467 = vector.broadcast %455 : f32 to vector<8x128xf32>
    %468 = arith.mulf %19, %467 : vector<8x128xf32>
    %469 = vector.broadcast %461 : f32 to vector<8x128xf32>
    %470 = arith.mulf %19, %469 : vector<8x128xf32>
    %471 = vector.broadcast %456 : f32 to vector<8x128xf32>
    %472 = arith.mulf %22, %471 : vector<8x128xf32>
    %473 = arith.addf %468, %472 : vector<8x128xf32>
    %474 = vector.broadcast %462 : f32 to vector<8x128xf32>
    %475 = arith.mulf %22, %474 : vector<8x128xf32>
    %476 = arith.addf %470, %475 : vector<8x128xf32>
    %477 = vector.broadcast %457 : f32 to vector<8x128xf32>
    %478 = arith.mulf %25, %477 : vector<8x128xf32>
    %479 = arith.addf %473, %478 : vector<8x128xf32>
    %480 = vector.broadcast %463 : f32 to vector<8x128xf32>
    %481 = arith.mulf %25, %480 : vector<8x128xf32>
    %482 = arith.addf %476, %481 : vector<8x128xf32>
    %483 = vector.broadcast %458 : f32 to vector<8x128xf32>
    %484 = arith.mulf %28, %483 : vector<8x128xf32>
    %485 = arith.addf %479, %484 : vector<8x128xf32>
    %486 = vector.broadcast %464 : f32 to vector<8x128xf32>
    %487 = arith.mulf %28, %486 : vector<8x128xf32>
    %488 = arith.addf %482, %487 : vector<8x128xf32>
    %489 = vector.broadcast %459 : f32 to vector<8x128xf32>
    %490 = arith.mulf %31, %489 : vector<8x128xf32>
    %491 = arith.addf %485, %490 : vector<8x128xf32>
    %492 = vector.broadcast %465 : f32 to vector<8x128xf32>
    %493 = arith.mulf %31, %492 : vector<8x128xf32>
    %494 = arith.addf %488, %493 : vector<8x128xf32>
    %495 = vector.broadcast %460 : f32 to vector<8x128xf32>
    %496 = arith.addf %491, %495 : vector<8x128xf32>
    %497 = vector.broadcast %466 : f32 to vector<8x128xf32>
    %498 = arith.addf %494, %497 : vector<8x128xf32>
    %499 = arith.mulf %498, %498 : vector<8x128xf32>
    %cst_53 = arith.constant 2.000000e-01 : f32
    %500 = vector.broadcast %cst_53 : f32 to vector<8x128xf32>
    %501 = arith.addf %499, %500 : vector<8x128xf32>
    %502 = tpu.reciprocal %501 : vector<8x128xf32> -> vector<8x128xf32>
    %cst_54 = arith.constant 5.000000e+00 : f32
    %503 = vector.broadcast %cst_54 : f32 to vector<8x128xf32>
    %504 = arith.subf %503, %496 : vector<8x128xf32>
    %505 = arith.mulf %504, %502 : vector<8x128xf32>
    %506 = math.exp %505 : vector<8x128xf32>
    %cst_55 = arith.constant 0.000000e+00 : f32
    %507 = vector.broadcast %cst_55 : f32 to vector<8x128xf32>
    %508 = arith.subf %507, %506 : vector<8x128xf32>
    %509 = math.exp %508 : vector<8x128xf32>
    %510 = arith.mulf %502, %506 : vector<8x128xf32>
    %511 = arith.mulf %510, %509 : vector<8x128xf32>
    %512 = vector.broadcast %455 : f32 to vector<8x128xf32>
    %513 = arith.mulf %34, %512 : vector<8x128xf32>
    %514 = vector.broadcast %461 : f32 to vector<8x128xf32>
    %515 = arith.mulf %34, %514 : vector<8x128xf32>
    %516 = vector.broadcast %456 : f32 to vector<8x128xf32>
    %517 = arith.mulf %37, %516 : vector<8x128xf32>
    %518 = arith.addf %513, %517 : vector<8x128xf32>
    %519 = vector.broadcast %462 : f32 to vector<8x128xf32>
    %520 = arith.mulf %37, %519 : vector<8x128xf32>
    %521 = arith.addf %515, %520 : vector<8x128xf32>
    %522 = vector.broadcast %457 : f32 to vector<8x128xf32>
    %523 = arith.mulf %40, %522 : vector<8x128xf32>
    %524 = arith.addf %518, %523 : vector<8x128xf32>
    %525 = vector.broadcast %463 : f32 to vector<8x128xf32>
    %526 = arith.mulf %40, %525 : vector<8x128xf32>
    %527 = arith.addf %521, %526 : vector<8x128xf32>
    %528 = vector.broadcast %458 : f32 to vector<8x128xf32>
    %529 = arith.mulf %43, %528 : vector<8x128xf32>
    %530 = arith.addf %524, %529 : vector<8x128xf32>
    %531 = vector.broadcast %464 : f32 to vector<8x128xf32>
    %532 = arith.mulf %43, %531 : vector<8x128xf32>
    %533 = arith.addf %527, %532 : vector<8x128xf32>
    %534 = vector.broadcast %459 : f32 to vector<8x128xf32>
    %535 = arith.mulf %46, %534 : vector<8x128xf32>
    %536 = arith.addf %530, %535 : vector<8x128xf32>
    %537 = vector.broadcast %465 : f32 to vector<8x128xf32>
    %538 = arith.mulf %46, %537 : vector<8x128xf32>
    %539 = arith.addf %533, %538 : vector<8x128xf32>
    %540 = vector.broadcast %460 : f32 to vector<8x128xf32>
    %541 = arith.addf %536, %540 : vector<8x128xf32>
    %542 = vector.broadcast %466 : f32 to vector<8x128xf32>
    %543 = arith.addf %539, %542 : vector<8x128xf32>
    %544 = arith.mulf %543, %543 : vector<8x128xf32>
    %cst_56 = arith.constant 2.000000e-01 : f32
    %545 = vector.broadcast %cst_56 : f32 to vector<8x128xf32>
    %546 = arith.addf %544, %545 : vector<8x128xf32>
    %547 = tpu.reciprocal %546 : vector<8x128xf32> -> vector<8x128xf32>
    %cst_57 = arith.constant 5.000000e+00 : f32
    %548 = vector.broadcast %cst_57 : f32 to vector<8x128xf32>
    %549 = arith.subf %548, %541 : vector<8x128xf32>
    %550 = arith.mulf %549, %547 : vector<8x128xf32>
    %551 = math.exp %550 : vector<8x128xf32>
    %cst_58 = arith.constant 0.000000e+00 : f32
    %552 = vector.broadcast %cst_58 : f32 to vector<8x128xf32>
    %553 = arith.subf %552, %551 : vector<8x128xf32>
    %554 = math.exp %553 : vector<8x128xf32>
    %555 = arith.mulf %547, %551 : vector<8x128xf32>
    %556 = arith.mulf %555, %554 : vector<8x128xf32>
    %c60 = arith.constant 60 : index
    %557 = memref.load %arg1[%c60] : memref<200xf32, #tpu.memory_space<smem>>
    %558 = vector.broadcast %557 : f32 to vector<8x128xf32>
    %559 = arith.mulf %103, %558 : vector<8x128xf32>
    %c61 = arith.constant 61 : index
    %560 = memref.load %arg1[%c61] : memref<200xf32, #tpu.memory_space<smem>>
    %561 = vector.broadcast %560 : f32 to vector<8x128xf32>
    %562 = arith.mulf %205, %561 : vector<8x128xf32>
    %563 = arith.addf %559, %562 : vector<8x128xf32>
    %c62 = arith.constant 62 : index
    %564 = memref.load %arg1[%c62] : memref<200xf32, #tpu.memory_space<smem>>
    %565 = vector.broadcast %564 : f32 to vector<8x128xf32>
    %566 = arith.mulf %307, %565 : vector<8x128xf32>
    %567 = arith.addf %563, %566 : vector<8x128xf32>
    %c63 = arith.constant 63 : index
    %568 = memref.load %arg1[%c63] : memref<200xf32, #tpu.memory_space<smem>>
    %569 = vector.broadcast %568 : f32 to vector<8x128xf32>
    %570 = arith.mulf %409, %569 : vector<8x128xf32>
    %571 = arith.addf %567, %570 : vector<8x128xf32>
    %c64 = arith.constant 64 : index
    %572 = memref.load %arg1[%c64] : memref<200xf32, #tpu.memory_space<smem>>
    %573 = vector.broadcast %572 : f32 to vector<8x128xf32>
    %574 = arith.mulf %511, %573 : vector<8x128xf32>
    %575 = arith.addf %571, %574 : vector<8x128xf32>
    %c85 = arith.constant 85 : index
    %576 = memref.load %arg1[%c85] : memref<200xf32, #tpu.memory_space<smem>>
    %577 = vector.broadcast %576 : f32 to vector<8x128xf32>
    %578 = arith.mulf %148, %577 : vector<8x128xf32>
    %c86 = arith.constant 86 : index
    %579 = memref.load %arg1[%c86] : memref<200xf32, #tpu.memory_space<smem>>
    %580 = vector.broadcast %579 : f32 to vector<8x128xf32>
    %581 = arith.mulf %250, %580 : vector<8x128xf32>
    %582 = arith.addf %578, %581 : vector<8x128xf32>
    %c87 = arith.constant 87 : index
    %583 = memref.load %arg1[%c87] : memref<200xf32, #tpu.memory_space<smem>>
    %584 = vector.broadcast %583 : f32 to vector<8x128xf32>
    %585 = arith.mulf %352, %584 : vector<8x128xf32>
    %586 = arith.addf %582, %585 : vector<8x128xf32>
    %c88 = arith.constant 88 : index
    %587 = memref.load %arg1[%c88] : memref<200xf32, #tpu.memory_space<smem>>
    %588 = vector.broadcast %587 : f32 to vector<8x128xf32>
    %589 = arith.mulf %454, %588 : vector<8x128xf32>
    %590 = arith.addf %586, %589 : vector<8x128xf32>
    %c89 = arith.constant 89 : index
    %591 = memref.load %arg1[%c89] : memref<200xf32, #tpu.memory_space<smem>>
    %592 = vector.broadcast %591 : f32 to vector<8x128xf32>
    %593 = arith.mulf %556, %592 : vector<8x128xf32>
    %594 = arith.addf %590, %593 : vector<8x128xf32>
    %595 = arith.addf %575, %594 : vector<8x128xf32>
    %c110 = arith.constant 110 : index
    %596 = memref.load %arg1[%c110] : memref<200xf32, #tpu.memory_space<smem>>
    %597 = vector.broadcast %596 : f32 to vector<8x128xf32>
    %598 = arith.mulf %4, %597 : vector<8x128xf32>
    %c111 = arith.constant 111 : index
    %599 = memref.load %arg1[%c111] : memref<200xf32, #tpu.memory_space<smem>>
    %600 = vector.broadcast %599 : f32 to vector<8x128xf32>
    %601 = arith.mulf %7, %600 : vector<8x128xf32>
    %602 = arith.addf %598, %601 : vector<8x128xf32>
    %c112 = arith.constant 112 : index
    %603 = memref.load %arg1[%c112] : memref<200xf32, #tpu.memory_space<smem>>
    %604 = vector.broadcast %603 : f32 to vector<8x128xf32>
    %605 = arith.mulf %10, %604 : vector<8x128xf32>
    %606 = arith.addf %602, %605 : vector<8x128xf32>
    %c113 = arith.constant 113 : index
    %607 = memref.load %arg1[%c113] : memref<200xf32, #tpu.memory_space<smem>>
    %608 = vector.broadcast %607 : f32 to vector<8x128xf32>
    %609 = arith.mulf %13, %608 : vector<8x128xf32>
    %610 = arith.addf %606, %609 : vector<8x128xf32>
    %c114 = arith.constant 114 : index
    %611 = memref.load %arg1[%c114] : memref<200xf32, #tpu.memory_space<smem>>
    %612 = vector.broadcast %611 : f32 to vector<8x128xf32>
    %613 = arith.mulf %16, %612 : vector<8x128xf32>
    %614 = arith.addf %610, %613 : vector<8x128xf32>
    %615 = arith.addf %595, %614 : vector<8x128xf32>
    %c135 = arith.constant 135 : index
    %616 = memref.load %arg1[%c135] : memref<200xf32, #tpu.memory_space<smem>>
    %617 = vector.broadcast %616 : f32 to vector<8x128xf32>
    %618 = arith.addf %615, %617 : vector<8x128xf32>
    %c140 = arith.constant 140 : index
    %619 = memref.load %arg1[%c140] : memref<200xf32, #tpu.memory_space<smem>>
    %620 = vector.broadcast %619 : f32 to vector<8x128xf32>
    %621 = arith.mulf %19, %620 : vector<8x128xf32>
    %c141 = arith.constant 141 : index
    %622 = memref.load %arg1[%c141] : memref<200xf32, #tpu.memory_space<smem>>
    %623 = vector.broadcast %622 : f32 to vector<8x128xf32>
    %624 = arith.mulf %22, %623 : vector<8x128xf32>
    %625 = arith.addf %621, %624 : vector<8x128xf32>
    %c142 = arith.constant 142 : index
    %626 = memref.load %arg1[%c142] : memref<200xf32, #tpu.memory_space<smem>>
    %627 = vector.broadcast %626 : f32 to vector<8x128xf32>
    %628 = arith.mulf %25, %627 : vector<8x128xf32>
    %629 = arith.addf %625, %628 : vector<8x128xf32>
    %c143 = arith.constant 143 : index
    %630 = memref.load %arg1[%c143] : memref<200xf32, #tpu.memory_space<smem>>
    %631 = vector.broadcast %630 : f32 to vector<8x128xf32>
    %632 = arith.mulf %28, %631 : vector<8x128xf32>
    %633 = arith.addf %629, %632 : vector<8x128xf32>
    %c144 = arith.constant 144 : index
    %634 = memref.load %arg1[%c144] : memref<200xf32, #tpu.memory_space<smem>>
    %635 = vector.broadcast %634 : f32 to vector<8x128xf32>
    %636 = arith.mulf %31, %635 : vector<8x128xf32>
    %637 = arith.addf %633, %636 : vector<8x128xf32>
    %c165 = arith.constant 165 : index
    %638 = memref.load %arg1[%c165] : memref<200xf32, #tpu.memory_space<smem>>
    %639 = vector.broadcast %638 : f32 to vector<8x128xf32>
    %640 = arith.addf %637, %639 : vector<8x128xf32>
    %c170 = arith.constant 170 : index
    %641 = memref.load %arg1[%c170] : memref<200xf32, #tpu.memory_space<smem>>
    %642 = vector.broadcast %641 : f32 to vector<8x128xf32>
    %643 = arith.mulf %34, %642 : vector<8x128xf32>
    %c171 = arith.constant 171 : index
    %644 = memref.load %arg1[%c171] : memref<200xf32, #tpu.memory_space<smem>>
    %645 = vector.broadcast %644 : f32 to vector<8x128xf32>
    %646 = arith.mulf %37, %645 : vector<8x128xf32>
    %647 = arith.addf %643, %646 : vector<8x128xf32>
    %c172 = arith.constant 172 : index
    %648 = memref.load %arg1[%c172] : memref<200xf32, #tpu.memory_space<smem>>
    %649 = vector.broadcast %648 : f32 to vector<8x128xf32>
    %650 = arith.mulf %40, %649 : vector<8x128xf32>
    %651 = arith.addf %647, %650 : vector<8x128xf32>
    %c173 = arith.constant 173 : index
    %652 = memref.load %arg1[%c173] : memref<200xf32, #tpu.memory_space<smem>>
    %653 = vector.broadcast %652 : f32 to vector<8x128xf32>
    %654 = arith.mulf %43, %653 : vector<8x128xf32>
    %655 = arith.addf %651, %654 : vector<8x128xf32>
    %c174 = arith.constant 174 : index
    %656 = memref.load %arg1[%c174] : memref<200xf32, #tpu.memory_space<smem>>
    %657 = vector.broadcast %656 : f32 to vector<8x128xf32>
    %658 = arith.mulf %46, %657 : vector<8x128xf32>
    %659 = arith.addf %655, %658 : vector<8x128xf32>
    %c195 = arith.constant 195 : index
    %660 = memref.load %arg1[%c195] : memref<200xf32, #tpu.memory_space<smem>>
    %661 = vector.broadcast %660 : f32 to vector<8x128xf32>
    %662 = arith.addf %659, %661 : vector<8x128xf32>
    %663 = arith.mulf %618, %640 : vector<8x128xf32>
    %664 = arith.mulf %663, %662 : vector<8x128xf32>
    %c65 = arith.constant 65 : index
    %665 = memref.load %arg1[%c65] : memref<200xf32, #tpu.memory_space<smem>>
    %666 = vector.broadcast %665 : f32 to vector<8x128xf32>
    %667 = arith.mulf %103, %666 : vector<8x128xf32>
    %c66 = arith.constant 66 : index
    %668 = memref.load %arg1[%c66] : memref<200xf32, #tpu.memory_space<smem>>
    %669 = vector.broadcast %668 : f32 to vector<8x128xf32>
    %670 = arith.mulf %205, %669 : vector<8x128xf32>
    %671 = arith.addf %667, %670 : vector<8x128xf32>
    %c67 = arith.constant 67 : index
    %672 = memref.load %arg1[%c67] : memref<200xf32, #tpu.memory_space<smem>>
    %673 = vector.broadcast %672 : f32 to vector<8x128xf32>
    %674 = arith.mulf %307, %673 : vector<8x128xf32>
    %675 = arith.addf %671, %674 : vector<8x128xf32>
    %c68 = arith.constant 68 : index
    %676 = memref.load %arg1[%c68] : memref<200xf32, #tpu.memory_space<smem>>
    %677 = vector.broadcast %676 : f32 to vector<8x128xf32>
    %678 = arith.mulf %409, %677 : vector<8x128xf32>
    %679 = arith.addf %675, %678 : vector<8x128xf32>
    %c69 = arith.constant 69 : index
    %680 = memref.load %arg1[%c69] : memref<200xf32, #tpu.memory_space<smem>>
    %681 = vector.broadcast %680 : f32 to vector<8x128xf32>
    %682 = arith.mulf %511, %681 : vector<8x128xf32>
    %683 = arith.addf %679, %682 : vector<8x128xf32>
    %c90 = arith.constant 90 : index
    %684 = memref.load %arg1[%c90] : memref<200xf32, #tpu.memory_space<smem>>
    %685 = vector.broadcast %684 : f32 to vector<8x128xf32>
    %686 = arith.mulf %148, %685 : vector<8x128xf32>
    %c91 = arith.constant 91 : index
    %687 = memref.load %arg1[%c91] : memref<200xf32, #tpu.memory_space<smem>>
    %688 = vector.broadcast %687 : f32 to vector<8x128xf32>
    %689 = arith.mulf %250, %688 : vector<8x128xf32>
    %690 = arith.addf %686, %689 : vector<8x128xf32>
    %c92 = arith.constant 92 : index
    %691 = memref.load %arg1[%c92] : memref<200xf32, #tpu.memory_space<smem>>
    %692 = vector.broadcast %691 : f32 to vector<8x128xf32>
    %693 = arith.mulf %352, %692 : vector<8x128xf32>
    %694 = arith.addf %690, %693 : vector<8x128xf32>
    %c93 = arith.constant 93 : index
    %695 = memref.load %arg1[%c93] : memref<200xf32, #tpu.memory_space<smem>>
    %696 = vector.broadcast %695 : f32 to vector<8x128xf32>
    %697 = arith.mulf %454, %696 : vector<8x128xf32>
    %698 = arith.addf %694, %697 : vector<8x128xf32>
    %c94 = arith.constant 94 : index
    %699 = memref.load %arg1[%c94] : memref<200xf32, #tpu.memory_space<smem>>
    %700 = vector.broadcast %699 : f32 to vector<8x128xf32>
    %701 = arith.mulf %556, %700 : vector<8x128xf32>
    %702 = arith.addf %698, %701 : vector<8x128xf32>
    %703 = arith.addf %683, %702 : vector<8x128xf32>
    %c115 = arith.constant 115 : index
    %704 = memref.load %arg1[%c115] : memref<200xf32, #tpu.memory_space<smem>>
    %705 = vector.broadcast %704 : f32 to vector<8x128xf32>
    %706 = arith.mulf %4, %705 : vector<8x128xf32>
    %c116 = arith.constant 116 : index
    %707 = memref.load %arg1[%c116] : memref<200xf32, #tpu.memory_space<smem>>
    %708 = vector.broadcast %707 : f32 to vector<8x128xf32>
    %709 = arith.mulf %7, %708 : vector<8x128xf32>
    %710 = arith.addf %706, %709 : vector<8x128xf32>
    %c117 = arith.constant 117 : index
    %711 = memref.load %arg1[%c117] : memref<200xf32, #tpu.memory_space<smem>>
    %712 = vector.broadcast %711 : f32 to vector<8x128xf32>
    %713 = arith.mulf %10, %712 : vector<8x128xf32>
    %714 = arith.addf %710, %713 : vector<8x128xf32>
    %c118 = arith.constant 118 : index
    %715 = memref.load %arg1[%c118] : memref<200xf32, #tpu.memory_space<smem>>
    %716 = vector.broadcast %715 : f32 to vector<8x128xf32>
    %717 = arith.mulf %13, %716 : vector<8x128xf32>
    %718 = arith.addf %714, %717 : vector<8x128xf32>
    %c119 = arith.constant 119 : index
    %719 = memref.load %arg1[%c119] : memref<200xf32, #tpu.memory_space<smem>>
    %720 = vector.broadcast %719 : f32 to vector<8x128xf32>
    %721 = arith.mulf %16, %720 : vector<8x128xf32>
    %722 = arith.addf %718, %721 : vector<8x128xf32>
    %723 = arith.addf %703, %722 : vector<8x128xf32>
    %c136 = arith.constant 136 : index
    %724 = memref.load %arg1[%c136] : memref<200xf32, #tpu.memory_space<smem>>
    %725 = vector.broadcast %724 : f32 to vector<8x128xf32>
    %726 = arith.addf %723, %725 : vector<8x128xf32>
    %c145 = arith.constant 145 : index
    %727 = memref.load %arg1[%c145] : memref<200xf32, #tpu.memory_space<smem>>
    %728 = vector.broadcast %727 : f32 to vector<8x128xf32>
    %729 = arith.mulf %19, %728 : vector<8x128xf32>
    %c146 = arith.constant 146 : index
    %730 = memref.load %arg1[%c146] : memref<200xf32, #tpu.memory_space<smem>>
    %731 = vector.broadcast %730 : f32 to vector<8x128xf32>
    %732 = arith.mulf %22, %731 : vector<8x128xf32>
    %733 = arith.addf %729, %732 : vector<8x128xf32>
    %c147 = arith.constant 147 : index
    %734 = memref.load %arg1[%c147] : memref<200xf32, #tpu.memory_space<smem>>
    %735 = vector.broadcast %734 : f32 to vector<8x128xf32>
    %736 = arith.mulf %25, %735 : vector<8x128xf32>
    %737 = arith.addf %733, %736 : vector<8x128xf32>
    %c148 = arith.constant 148 : index
    %738 = memref.load %arg1[%c148] : memref<200xf32, #tpu.memory_space<smem>>
    %739 = vector.broadcast %738 : f32 to vector<8x128xf32>
    %740 = arith.mulf %28, %739 : vector<8x128xf32>
    %741 = arith.addf %737, %740 : vector<8x128xf32>
    %c149 = arith.constant 149 : index
    %742 = memref.load %arg1[%c149] : memref<200xf32, #tpu.memory_space<smem>>
    %743 = vector.broadcast %742 : f32 to vector<8x128xf32>
    %744 = arith.mulf %31, %743 : vector<8x128xf32>
    %745 = arith.addf %741, %744 : vector<8x128xf32>
    %c166 = arith.constant 166 : index
    %746 = memref.load %arg1[%c166] : memref<200xf32, #tpu.memory_space<smem>>
    %747 = vector.broadcast %746 : f32 to vector<8x128xf32>
    %748 = arith.addf %745, %747 : vector<8x128xf32>
    %c175 = arith.constant 175 : index
    %749 = memref.load %arg1[%c175] : memref<200xf32, #tpu.memory_space<smem>>
    %750 = vector.broadcast %749 : f32 to vector<8x128xf32>
    %751 = arith.mulf %34, %750 : vector<8x128xf32>
    %c176 = arith.constant 176 : index
    %752 = memref.load %arg1[%c176] : memref<200xf32, #tpu.memory_space<smem>>
    %753 = vector.broadcast %752 : f32 to vector<8x128xf32>
    %754 = arith.mulf %37, %753 : vector<8x128xf32>
    %755 = arith.addf %751, %754 : vector<8x128xf32>
    %c177 = arith.constant 177 : index
    %756 = memref.load %arg1[%c177] : memref<200xf32, #tpu.memory_space<smem>>
    %757 = vector.broadcast %756 : f32 to vector<8x128xf32>
    %758 = arith.mulf %40, %757 : vector<8x128xf32>
    %759 = arith.addf %755, %758 : vector<8x128xf32>
    %c178 = arith.constant 178 : index
    %760 = memref.load %arg1[%c178] : memref<200xf32, #tpu.memory_space<smem>>
    %761 = vector.broadcast %760 : f32 to vector<8x128xf32>
    %762 = arith.mulf %43, %761 : vector<8x128xf32>
    %763 = arith.addf %759, %762 : vector<8x128xf32>
    %c179 = arith.constant 179 : index
    %764 = memref.load %arg1[%c179] : memref<200xf32, #tpu.memory_space<smem>>
    %765 = vector.broadcast %764 : f32 to vector<8x128xf32>
    %766 = arith.mulf %46, %765 : vector<8x128xf32>
    %767 = arith.addf %763, %766 : vector<8x128xf32>
    %c196 = arith.constant 196 : index
    %768 = memref.load %arg1[%c196] : memref<200xf32, #tpu.memory_space<smem>>
    %769 = vector.broadcast %768 : f32 to vector<8x128xf32>
    %770 = arith.addf %767, %769 : vector<8x128xf32>
    %771 = arith.mulf %726, %748 : vector<8x128xf32>
    %772 = arith.mulf %771, %770 : vector<8x128xf32>
    %773 = arith.addf %664, %772 : vector<8x128xf32>
    %c70 = arith.constant 70 : index
    %774 = memref.load %arg1[%c70] : memref<200xf32, #tpu.memory_space<smem>>
    %775 = vector.broadcast %774 : f32 to vector<8x128xf32>
    %776 = arith.mulf %103, %775 : vector<8x128xf32>
    %c71 = arith.constant 71 : index
    %777 = memref.load %arg1[%c71] : memref<200xf32, #tpu.memory_space<smem>>
    %778 = vector.broadcast %777 : f32 to vector<8x128xf32>
    %779 = arith.mulf %205, %778 : vector<8x128xf32>
    %780 = arith.addf %776, %779 : vector<8x128xf32>
    %c72 = arith.constant 72 : index
    %781 = memref.load %arg1[%c72] : memref<200xf32, #tpu.memory_space<smem>>
    %782 = vector.broadcast %781 : f32 to vector<8x128xf32>
    %783 = arith.mulf %307, %782 : vector<8x128xf32>
    %784 = arith.addf %780, %783 : vector<8x128xf32>
    %c73 = arith.constant 73 : index
    %785 = memref.load %arg1[%c73] : memref<200xf32, #tpu.memory_space<smem>>
    %786 = vector.broadcast %785 : f32 to vector<8x128xf32>
    %787 = arith.mulf %409, %786 : vector<8x128xf32>
    %788 = arith.addf %784, %787 : vector<8x128xf32>
    %c74 = arith.constant 74 : index
    %789 = memref.load %arg1[%c74] : memref<200xf32, #tpu.memory_space<smem>>
    %790 = vector.broadcast %789 : f32 to vector<8x128xf32>
    %791 = arith.mulf %511, %790 : vector<8x128xf32>
    %792 = arith.addf %788, %791 : vector<8x128xf32>
    %c95 = arith.constant 95 : index
    %793 = memref.load %arg1[%c95] : memref<200xf32, #tpu.memory_space<smem>>
    %794 = vector.broadcast %793 : f32 to vector<8x128xf32>
    %795 = arith.mulf %148, %794 : vector<8x128xf32>
    %c96 = arith.constant 96 : index
    %796 = memref.load %arg1[%c96] : memref<200xf32, #tpu.memory_space<smem>>
    %797 = vector.broadcast %796 : f32 to vector<8x128xf32>
    %798 = arith.mulf %250, %797 : vector<8x128xf32>
    %799 = arith.addf %795, %798 : vector<8x128xf32>
    %c97 = arith.constant 97 : index
    %800 = memref.load %arg1[%c97] : memref<200xf32, #tpu.memory_space<smem>>
    %801 = vector.broadcast %800 : f32 to vector<8x128xf32>
    %802 = arith.mulf %352, %801 : vector<8x128xf32>
    %803 = arith.addf %799, %802 : vector<8x128xf32>
    %c98 = arith.constant 98 : index
    %804 = memref.load %arg1[%c98] : memref<200xf32, #tpu.memory_space<smem>>
    %805 = vector.broadcast %804 : f32 to vector<8x128xf32>
    %806 = arith.mulf %454, %805 : vector<8x128xf32>
    %807 = arith.addf %803, %806 : vector<8x128xf32>
    %c99 = arith.constant 99 : index
    %808 = memref.load %arg1[%c99] : memref<200xf32, #tpu.memory_space<smem>>
    %809 = vector.broadcast %808 : f32 to vector<8x128xf32>
    %810 = arith.mulf %556, %809 : vector<8x128xf32>
    %811 = arith.addf %807, %810 : vector<8x128xf32>
    %812 = arith.addf %792, %811 : vector<8x128xf32>
    %c120 = arith.constant 120 : index
    %813 = memref.load %arg1[%c120] : memref<200xf32, #tpu.memory_space<smem>>
    %814 = vector.broadcast %813 : f32 to vector<8x128xf32>
    %815 = arith.mulf %4, %814 : vector<8x128xf32>
    %c121 = arith.constant 121 : index
    %816 = memref.load %arg1[%c121] : memref<200xf32, #tpu.memory_space<smem>>
    %817 = vector.broadcast %816 : f32 to vector<8x128xf32>
    %818 = arith.mulf %7, %817 : vector<8x128xf32>
    %819 = arith.addf %815, %818 : vector<8x128xf32>
    %c122 = arith.constant 122 : index
    %820 = memref.load %arg1[%c122] : memref<200xf32, #tpu.memory_space<smem>>
    %821 = vector.broadcast %820 : f32 to vector<8x128xf32>
    %822 = arith.mulf %10, %821 : vector<8x128xf32>
    %823 = arith.addf %819, %822 : vector<8x128xf32>
    %c123 = arith.constant 123 : index
    %824 = memref.load %arg1[%c123] : memref<200xf32, #tpu.memory_space<smem>>
    %825 = vector.broadcast %824 : f32 to vector<8x128xf32>
    %826 = arith.mulf %13, %825 : vector<8x128xf32>
    %827 = arith.addf %823, %826 : vector<8x128xf32>
    %c124 = arith.constant 124 : index
    %828 = memref.load %arg1[%c124] : memref<200xf32, #tpu.memory_space<smem>>
    %829 = vector.broadcast %828 : f32 to vector<8x128xf32>
    %830 = arith.mulf %16, %829 : vector<8x128xf32>
    %831 = arith.addf %827, %830 : vector<8x128xf32>
    %832 = arith.addf %812, %831 : vector<8x128xf32>
    %c137 = arith.constant 137 : index
    %833 = memref.load %arg1[%c137] : memref<200xf32, #tpu.memory_space<smem>>
    %834 = vector.broadcast %833 : f32 to vector<8x128xf32>
    %835 = arith.addf %832, %834 : vector<8x128xf32>
    %c150 = arith.constant 150 : index
    %836 = memref.load %arg1[%c150] : memref<200xf32, #tpu.memory_space<smem>>
    %837 = vector.broadcast %836 : f32 to vector<8x128xf32>
    %838 = arith.mulf %19, %837 : vector<8x128xf32>
    %c151 = arith.constant 151 : index
    %839 = memref.load %arg1[%c151] : memref<200xf32, #tpu.memory_space<smem>>
    %840 = vector.broadcast %839 : f32 to vector<8x128xf32>
    %841 = arith.mulf %22, %840 : vector<8x128xf32>
    %842 = arith.addf %838, %841 : vector<8x128xf32>
    %c152 = arith.constant 152 : index
    %843 = memref.load %arg1[%c152] : memref<200xf32, #tpu.memory_space<smem>>
    %844 = vector.broadcast %843 : f32 to vector<8x128xf32>
    %845 = arith.mulf %25, %844 : vector<8x128xf32>
    %846 = arith.addf %842, %845 : vector<8x128xf32>
    %c153 = arith.constant 153 : index
    %847 = memref.load %arg1[%c153] : memref<200xf32, #tpu.memory_space<smem>>
    %848 = vector.broadcast %847 : f32 to vector<8x128xf32>
    %849 = arith.mulf %28, %848 : vector<8x128xf32>
    %850 = arith.addf %846, %849 : vector<8x128xf32>
    %c154 = arith.constant 154 : index
    %851 = memref.load %arg1[%c154] : memref<200xf32, #tpu.memory_space<smem>>
    %852 = vector.broadcast %851 : f32 to vector<8x128xf32>
    %853 = arith.mulf %31, %852 : vector<8x128xf32>
    %854 = arith.addf %850, %853 : vector<8x128xf32>
    %c167 = arith.constant 167 : index
    %855 = memref.load %arg1[%c167] : memref<200xf32, #tpu.memory_space<smem>>
    %856 = vector.broadcast %855 : f32 to vector<8x128xf32>
    %857 = arith.addf %854, %856 : vector<8x128xf32>
    %c180 = arith.constant 180 : index
    %858 = memref.load %arg1[%c180] : memref<200xf32, #tpu.memory_space<smem>>
    %859 = vector.broadcast %858 : f32 to vector<8x128xf32>
    %860 = arith.mulf %34, %859 : vector<8x128xf32>
    %c181 = arith.constant 181 : index
    %861 = memref.load %arg1[%c181] : memref<200xf32, #tpu.memory_space<smem>>
    %862 = vector.broadcast %861 : f32 to vector<8x128xf32>
    %863 = arith.mulf %37, %862 : vector<8x128xf32>
    %864 = arith.addf %860, %863 : vector<8x128xf32>
    %c182 = arith.constant 182 : index
    %865 = memref.load %arg1[%c182] : memref<200xf32, #tpu.memory_space<smem>>
    %866 = vector.broadcast %865 : f32 to vector<8x128xf32>
    %867 = arith.mulf %40, %866 : vector<8x128xf32>
    %868 = arith.addf %864, %867 : vector<8x128xf32>
    %c183 = arith.constant 183 : index
    %869 = memref.load %arg1[%c183] : memref<200xf32, #tpu.memory_space<smem>>
    %870 = vector.broadcast %869 : f32 to vector<8x128xf32>
    %871 = arith.mulf %43, %870 : vector<8x128xf32>
    %872 = arith.addf %868, %871 : vector<8x128xf32>
    %c184 = arith.constant 184 : index
    %873 = memref.load %arg1[%c184] : memref<200xf32, #tpu.memory_space<smem>>
    %874 = vector.broadcast %873 : f32 to vector<8x128xf32>
    %875 = arith.mulf %46, %874 : vector<8x128xf32>
    %876 = arith.addf %872, %875 : vector<8x128xf32>
    %c197 = arith.constant 197 : index
    %877 = memref.load %arg1[%c197] : memref<200xf32, #tpu.memory_space<smem>>
    %878 = vector.broadcast %877 : f32 to vector<8x128xf32>
    %879 = arith.addf %876, %878 : vector<8x128xf32>
    %880 = arith.mulf %835, %857 : vector<8x128xf32>
    %881 = arith.mulf %880, %879 : vector<8x128xf32>
    %882 = arith.addf %773, %881 : vector<8x128xf32>
    %c75 = arith.constant 75 : index
    %883 = memref.load %arg1[%c75] : memref<200xf32, #tpu.memory_space<smem>>
    %884 = vector.broadcast %883 : f32 to vector<8x128xf32>
    %885 = arith.mulf %103, %884 : vector<8x128xf32>
    %c76 = arith.constant 76 : index
    %886 = memref.load %arg1[%c76] : memref<200xf32, #tpu.memory_space<smem>>
    %887 = vector.broadcast %886 : f32 to vector<8x128xf32>
    %888 = arith.mulf %205, %887 : vector<8x128xf32>
    %889 = arith.addf %885, %888 : vector<8x128xf32>
    %c77 = arith.constant 77 : index
    %890 = memref.load %arg1[%c77] : memref<200xf32, #tpu.memory_space<smem>>
    %891 = vector.broadcast %890 : f32 to vector<8x128xf32>
    %892 = arith.mulf %307, %891 : vector<8x128xf32>
    %893 = arith.addf %889, %892 : vector<8x128xf32>
    %c78 = arith.constant 78 : index
    %894 = memref.load %arg1[%c78] : memref<200xf32, #tpu.memory_space<smem>>
    %895 = vector.broadcast %894 : f32 to vector<8x128xf32>
    %896 = arith.mulf %409, %895 : vector<8x128xf32>
    %897 = arith.addf %893, %896 : vector<8x128xf32>
    %c79 = arith.constant 79 : index
    %898 = memref.load %arg1[%c79] : memref<200xf32, #tpu.memory_space<smem>>
    %899 = vector.broadcast %898 : f32 to vector<8x128xf32>
    %900 = arith.mulf %511, %899 : vector<8x128xf32>
    %901 = arith.addf %897, %900 : vector<8x128xf32>
    %c100 = arith.constant 100 : index
    %902 = memref.load %arg1[%c100] : memref<200xf32, #tpu.memory_space<smem>>
    %903 = vector.broadcast %902 : f32 to vector<8x128xf32>
    %904 = arith.mulf %148, %903 : vector<8x128xf32>
    %c101 = arith.constant 101 : index
    %905 = memref.load %arg1[%c101] : memref<200xf32, #tpu.memory_space<smem>>
    %906 = vector.broadcast %905 : f32 to vector<8x128xf32>
    %907 = arith.mulf %250, %906 : vector<8x128xf32>
    %908 = arith.addf %904, %907 : vector<8x128xf32>
    %c102 = arith.constant 102 : index
    %909 = memref.load %arg1[%c102] : memref<200xf32, #tpu.memory_space<smem>>
    %910 = vector.broadcast %909 : f32 to vector<8x128xf32>
    %911 = arith.mulf %352, %910 : vector<8x128xf32>
    %912 = arith.addf %908, %911 : vector<8x128xf32>
    %c103 = arith.constant 103 : index
    %913 = memref.load %arg1[%c103] : memref<200xf32, #tpu.memory_space<smem>>
    %914 = vector.broadcast %913 : f32 to vector<8x128xf32>
    %915 = arith.mulf %454, %914 : vector<8x128xf32>
    %916 = arith.addf %912, %915 : vector<8x128xf32>
    %c104 = arith.constant 104 : index
    %917 = memref.load %arg1[%c104] : memref<200xf32, #tpu.memory_space<smem>>
    %918 = vector.broadcast %917 : f32 to vector<8x128xf32>
    %919 = arith.mulf %556, %918 : vector<8x128xf32>
    %920 = arith.addf %916, %919 : vector<8x128xf32>
    %921 = arith.addf %901, %920 : vector<8x128xf32>
    %c125 = arith.constant 125 : index
    %922 = memref.load %arg1[%c125] : memref<200xf32, #tpu.memory_space<smem>>
    %923 = vector.broadcast %922 : f32 to vector<8x128xf32>
    %924 = arith.mulf %4, %923 : vector<8x128xf32>
    %c126 = arith.constant 126 : index
    %925 = memref.load %arg1[%c126] : memref<200xf32, #tpu.memory_space<smem>>
    %926 = vector.broadcast %925 : f32 to vector<8x128xf32>
    %927 = arith.mulf %7, %926 : vector<8x128xf32>
    %928 = arith.addf %924, %927 : vector<8x128xf32>
    %c127 = arith.constant 127 : index
    %929 = memref.load %arg1[%c127] : memref<200xf32, #tpu.memory_space<smem>>
    %930 = vector.broadcast %929 : f32 to vector<8x128xf32>
    %931 = arith.mulf %10, %930 : vector<8x128xf32>
    %932 = arith.addf %928, %931 : vector<8x128xf32>
    %c128 = arith.constant 128 : index
    %933 = memref.load %arg1[%c128] : memref<200xf32, #tpu.memory_space<smem>>
    %934 = vector.broadcast %933 : f32 to vector<8x128xf32>
    %935 = arith.mulf %13, %934 : vector<8x128xf32>
    %936 = arith.addf %932, %935 : vector<8x128xf32>
    %c129 = arith.constant 129 : index
    %937 = memref.load %arg1[%c129] : memref<200xf32, #tpu.memory_space<smem>>
    %938 = vector.broadcast %937 : f32 to vector<8x128xf32>
    %939 = arith.mulf %16, %938 : vector<8x128xf32>
    %940 = arith.addf %936, %939 : vector<8x128xf32>
    %941 = arith.addf %921, %940 : vector<8x128xf32>
    %c138 = arith.constant 138 : index
    %942 = memref.load %arg1[%c138] : memref<200xf32, #tpu.memory_space<smem>>
    %943 = vector.broadcast %942 : f32 to vector<8x128xf32>
    %944 = arith.addf %941, %943 : vector<8x128xf32>
    %c155 = arith.constant 155 : index
    %945 = memref.load %arg1[%c155] : memref<200xf32, #tpu.memory_space<smem>>
    %946 = vector.broadcast %945 : f32 to vector<8x128xf32>
    %947 = arith.mulf %19, %946 : vector<8x128xf32>
    %c156 = arith.constant 156 : index
    %948 = memref.load %arg1[%c156] : memref<200xf32, #tpu.memory_space<smem>>
    %949 = vector.broadcast %948 : f32 to vector<8x128xf32>
    %950 = arith.mulf %22, %949 : vector<8x128xf32>
    %951 = arith.addf %947, %950 : vector<8x128xf32>
    %c157 = arith.constant 157 : index
    %952 = memref.load %arg1[%c157] : memref<200xf32, #tpu.memory_space<smem>>
    %953 = vector.broadcast %952 : f32 to vector<8x128xf32>
    %954 = arith.mulf %25, %953 : vector<8x128xf32>
    %955 = arith.addf %951, %954 : vector<8x128xf32>
    %c158 = arith.constant 158 : index
    %956 = memref.load %arg1[%c158] : memref<200xf32, #tpu.memory_space<smem>>
    %957 = vector.broadcast %956 : f32 to vector<8x128xf32>
    %958 = arith.mulf %28, %957 : vector<8x128xf32>
    %959 = arith.addf %955, %958 : vector<8x128xf32>
    %c159 = arith.constant 159 : index
    %960 = memref.load %arg1[%c159] : memref<200xf32, #tpu.memory_space<smem>>
    %961 = vector.broadcast %960 : f32 to vector<8x128xf32>
    %962 = arith.mulf %31, %961 : vector<8x128xf32>
    %963 = arith.addf %959, %962 : vector<8x128xf32>
    %c168 = arith.constant 168 : index
    %964 = memref.load %arg1[%c168] : memref<200xf32, #tpu.memory_space<smem>>
    %965 = vector.broadcast %964 : f32 to vector<8x128xf32>
    %966 = arith.addf %963, %965 : vector<8x128xf32>
    %c185 = arith.constant 185 : index
    %967 = memref.load %arg1[%c185] : memref<200xf32, #tpu.memory_space<smem>>
    %968 = vector.broadcast %967 : f32 to vector<8x128xf32>
    %969 = arith.mulf %34, %968 : vector<8x128xf32>
    %c186 = arith.constant 186 : index
    %970 = memref.load %arg1[%c186] : memref<200xf32, #tpu.memory_space<smem>>
    %971 = vector.broadcast %970 : f32 to vector<8x128xf32>
    %972 = arith.mulf %37, %971 : vector<8x128xf32>
    %973 = arith.addf %969, %972 : vector<8x128xf32>
    %c187 = arith.constant 187 : index
    %974 = memref.load %arg1[%c187] : memref<200xf32, #tpu.memory_space<smem>>
    %975 = vector.broadcast %974 : f32 to vector<8x128xf32>
    %976 = arith.mulf %40, %975 : vector<8x128xf32>
    %977 = arith.addf %973, %976 : vector<8x128xf32>
    %c188 = arith.constant 188 : index
    %978 = memref.load %arg1[%c188] : memref<200xf32, #tpu.memory_space<smem>>
    %979 = vector.broadcast %978 : f32 to vector<8x128xf32>
    %980 = arith.mulf %43, %979 : vector<8x128xf32>
    %981 = arith.addf %977, %980 : vector<8x128xf32>
    %c189 = arith.constant 189 : index
    %982 = memref.load %arg1[%c189] : memref<200xf32, #tpu.memory_space<smem>>
    %983 = vector.broadcast %982 : f32 to vector<8x128xf32>
    %984 = arith.mulf %46, %983 : vector<8x128xf32>
    %985 = arith.addf %981, %984 : vector<8x128xf32>
    %c198 = arith.constant 198 : index
    %986 = memref.load %arg1[%c198] : memref<200xf32, #tpu.memory_space<smem>>
    %987 = vector.broadcast %986 : f32 to vector<8x128xf32>
    %988 = arith.addf %985, %987 : vector<8x128xf32>
    %989 = arith.mulf %944, %966 : vector<8x128xf32>
    %990 = arith.mulf %989, %988 : vector<8x128xf32>
    %991 = arith.addf %882, %990 : vector<8x128xf32>
    %c80 = arith.constant 80 : index
    %992 = memref.load %arg1[%c80] : memref<200xf32, #tpu.memory_space<smem>>
    %993 = vector.broadcast %992 : f32 to vector<8x128xf32>
    %994 = arith.mulf %103, %993 : vector<8x128xf32>
    %c81 = arith.constant 81 : index
    %995 = memref.load %arg1[%c81] : memref<200xf32, #tpu.memory_space<smem>>
    %996 = vector.broadcast %995 : f32 to vector<8x128xf32>
    %997 = arith.mulf %205, %996 : vector<8x128xf32>
    %998 = arith.addf %994, %997 : vector<8x128xf32>
    %c82 = arith.constant 82 : index
    %999 = memref.load %arg1[%c82] : memref<200xf32, #tpu.memory_space<smem>>
    %1000 = vector.broadcast %999 : f32 to vector<8x128xf32>
    %1001 = arith.mulf %307, %1000 : vector<8x128xf32>
    %1002 = arith.addf %998, %1001 : vector<8x128xf32>
    %c83 = arith.constant 83 : index
    %1003 = memref.load %arg1[%c83] : memref<200xf32, #tpu.memory_space<smem>>
    %1004 = vector.broadcast %1003 : f32 to vector<8x128xf32>
    %1005 = arith.mulf %409, %1004 : vector<8x128xf32>
    %1006 = arith.addf %1002, %1005 : vector<8x128xf32>
    %c84 = arith.constant 84 : index
    %1007 = memref.load %arg1[%c84] : memref<200xf32, #tpu.memory_space<smem>>
    %1008 = vector.broadcast %1007 : f32 to vector<8x128xf32>
    %1009 = arith.mulf %511, %1008 : vector<8x128xf32>
    %1010 = arith.addf %1006, %1009 : vector<8x128xf32>
    %c105 = arith.constant 105 : index
    %1011 = memref.load %arg1[%c105] : memref<200xf32, #tpu.memory_space<smem>>
    %1012 = vector.broadcast %1011 : f32 to vector<8x128xf32>
    %1013 = arith.mulf %148, %1012 : vector<8x128xf32>
    %c106 = arith.constant 106 : index
    %1014 = memref.load %arg1[%c106] : memref<200xf32, #tpu.memory_space<smem>>
    %1015 = vector.broadcast %1014 : f32 to vector<8x128xf32>
    %1016 = arith.mulf %250, %1015 : vector<8x128xf32>
    %1017 = arith.addf %1013, %1016 : vector<8x128xf32>
    %c107 = arith.constant 107 : index
    %1018 = memref.load %arg1[%c107] : memref<200xf32, #tpu.memory_space<smem>>
    %1019 = vector.broadcast %1018 : f32 to vector<8x128xf32>
    %1020 = arith.mulf %352, %1019 : vector<8x128xf32>
    %1021 = arith.addf %1017, %1020 : vector<8x128xf32>
    %c108 = arith.constant 108 : index
    %1022 = memref.load %arg1[%c108] : memref<200xf32, #tpu.memory_space<smem>>
    %1023 = vector.broadcast %1022 : f32 to vector<8x128xf32>
    %1024 = arith.mulf %454, %1023 : vector<8x128xf32>
    %1025 = arith.addf %1021, %1024 : vector<8x128xf32>
    %c109 = arith.constant 109 : index
    %1026 = memref.load %arg1[%c109] : memref<200xf32, #tpu.memory_space<smem>>
    %1027 = vector.broadcast %1026 : f32 to vector<8x128xf32>
    %1028 = arith.mulf %556, %1027 : vector<8x128xf32>
    %1029 = arith.addf %1025, %1028 : vector<8x128xf32>
    %1030 = arith.addf %1010, %1029 : vector<8x128xf32>
    %c130 = arith.constant 130 : index
    %1031 = memref.load %arg1[%c130] : memref<200xf32, #tpu.memory_space<smem>>
    %1032 = vector.broadcast %1031 : f32 to vector<8x128xf32>
    %1033 = arith.mulf %4, %1032 : vector<8x128xf32>
    %c131 = arith.constant 131 : index
    %1034 = memref.load %arg1[%c131] : memref<200xf32, #tpu.memory_space<smem>>
    %1035 = vector.broadcast %1034 : f32 to vector<8x128xf32>
    %1036 = arith.mulf %7, %1035 : vector<8x128xf32>
    %1037 = arith.addf %1033, %1036 : vector<8x128xf32>
    %c132 = arith.constant 132 : index
    %1038 = memref.load %arg1[%c132] : memref<200xf32, #tpu.memory_space<smem>>
    %1039 = vector.broadcast %1038 : f32 to vector<8x128xf32>
    %1040 = arith.mulf %10, %1039 : vector<8x128xf32>
    %1041 = arith.addf %1037, %1040 : vector<8x128xf32>
    %c133 = arith.constant 133 : index
    %1042 = memref.load %arg1[%c133] : memref<200xf32, #tpu.memory_space<smem>>
    %1043 = vector.broadcast %1042 : f32 to vector<8x128xf32>
    %1044 = arith.mulf %13, %1043 : vector<8x128xf32>
    %1045 = arith.addf %1041, %1044 : vector<8x128xf32>
    %c134 = arith.constant 134 : index
    %1046 = memref.load %arg1[%c134] : memref<200xf32, #tpu.memory_space<smem>>
    %1047 = vector.broadcast %1046 : f32 to vector<8x128xf32>
    %1048 = arith.mulf %16, %1047 : vector<8x128xf32>
    %1049 = arith.addf %1045, %1048 : vector<8x128xf32>
    %1050 = arith.addf %1030, %1049 : vector<8x128xf32>
    %c139 = arith.constant 139 : index
    %1051 = memref.load %arg1[%c139] : memref<200xf32, #tpu.memory_space<smem>>
    %1052 = vector.broadcast %1051 : f32 to vector<8x128xf32>
    %1053 = arith.addf %1050, %1052 : vector<8x128xf32>
    %c160 = arith.constant 160 : index
    %1054 = memref.load %arg1[%c160] : memref<200xf32, #tpu.memory_space<smem>>
    %1055 = vector.broadcast %1054 : f32 to vector<8x128xf32>
    %1056 = arith.mulf %19, %1055 : vector<8x128xf32>
    %c161 = arith.constant 161 : index
    %1057 = memref.load %arg1[%c161] : memref<200xf32, #tpu.memory_space<smem>>
    %1058 = vector.broadcast %1057 : f32 to vector<8x128xf32>
    %1059 = arith.mulf %22, %1058 : vector<8x128xf32>
    %1060 = arith.addf %1056, %1059 : vector<8x128xf32>
    %c162 = arith.constant 162 : index
    %1061 = memref.load %arg1[%c162] : memref<200xf32, #tpu.memory_space<smem>>
    %1062 = vector.broadcast %1061 : f32 to vector<8x128xf32>
    %1063 = arith.mulf %25, %1062 : vector<8x128xf32>
    %1064 = arith.addf %1060, %1063 : vector<8x128xf32>
    %c163 = arith.constant 163 : index
    %1065 = memref.load %arg1[%c163] : memref<200xf32, #tpu.memory_space<smem>>
    %1066 = vector.broadcast %1065 : f32 to vector<8x128xf32>
    %1067 = arith.mulf %28, %1066 : vector<8x128xf32>
    %1068 = arith.addf %1064, %1067 : vector<8x128xf32>
    %c164 = arith.constant 164 : index
    %1069 = memref.load %arg1[%c164] : memref<200xf32, #tpu.memory_space<smem>>
    %1070 = vector.broadcast %1069 : f32 to vector<8x128xf32>
    %1071 = arith.mulf %31, %1070 : vector<8x128xf32>
    %1072 = arith.addf %1068, %1071 : vector<8x128xf32>
    %c169 = arith.constant 169 : index
    %1073 = memref.load %arg1[%c169] : memref<200xf32, #tpu.memory_space<smem>>
    %1074 = vector.broadcast %1073 : f32 to vector<8x128xf32>
    %1075 = arith.addf %1072, %1074 : vector<8x128xf32>
    %c190 = arith.constant 190 : index
    %1076 = memref.load %arg1[%c190] : memref<200xf32, #tpu.memory_space<smem>>
    %1077 = vector.broadcast %1076 : f32 to vector<8x128xf32>
    %1078 = arith.mulf %34, %1077 : vector<8x128xf32>
    %c191 = arith.constant 191 : index
    %1079 = memref.load %arg1[%c191] : memref<200xf32, #tpu.memory_space<smem>>
    %1080 = vector.broadcast %1079 : f32 to vector<8x128xf32>
    %1081 = arith.mulf %37, %1080 : vector<8x128xf32>
    %1082 = arith.addf %1078, %1081 : vector<8x128xf32>
    %c192 = arith.constant 192 : index
    %1083 = memref.load %arg1[%c192] : memref<200xf32, #tpu.memory_space<smem>>
    %1084 = vector.broadcast %1083 : f32 to vector<8x128xf32>
    %1085 = arith.mulf %40, %1084 : vector<8x128xf32>
    %1086 = arith.addf %1082, %1085 : vector<8x128xf32>
    %c193 = arith.constant 193 : index
    %1087 = memref.load %arg1[%c193] : memref<200xf32, #tpu.memory_space<smem>>
    %1088 = vector.broadcast %1087 : f32 to vector<8x128xf32>
    %1089 = arith.mulf %43, %1088 : vector<8x128xf32>
    %1090 = arith.addf %1086, %1089 : vector<8x128xf32>
    %c194 = arith.constant 194 : index
    %1091 = memref.load %arg1[%c194] : memref<200xf32, #tpu.memory_space<smem>>
    %1092 = vector.broadcast %1091 : f32 to vector<8x128xf32>
    %1093 = arith.mulf %46, %1092 : vector<8x128xf32>
    %1094 = arith.addf %1090, %1093 : vector<8x128xf32>
    %c199 = arith.constant 199 : index
    %1095 = memref.load %arg1[%c199] : memref<200xf32, #tpu.memory_space<smem>>
    %1096 = vector.broadcast %1095 : f32 to vector<8x128xf32>
    %1097 = arith.addf %1094, %1096 : vector<8x128xf32>
    %1098 = arith.mulf %1053, %1075 : vector<8x128xf32>
    %1099 = arith.mulf %1098, %1097 : vector<8x128xf32>
    %1100 = arith.addf %991, %1099 : vector<8x128xf32>
    %1101 = arith.index_cast %1 : i32 to index
    %c0_59 = arith.constant 0 : index
    %1102 = vector.load %arg3[%1101, %c0_59] : memref<8x128xf32, #tpu.memory_space<vmem>>, vector<8x128xf32>
    tpu.vector_store %arg3[%1101, %c0_59], %1100 {strides = array<i32>} : memref<8x128xf32, #tpu.memory_space<vmem>>, vector<8x128xf32>,
    %c1_i32 = arith.constant 1 : i32
    return
  }
  func.func @transform_0(%arg0: i32) -> i32 {
    %c0_i32 = arith.constant 0 : i32
    %c0_i32_0 = arith.constant 0 : i32
    return %c0_i32 : i32
  }
  func.func @transform_1(%arg0: i32) -> (i32, i32, i32) {
    %c0_i32 = arith.constant 0 : i32
    %c0_i32_0 = arith.constant 0 : i32
    %c0_i32_1 = arith.constant 0 : i32
    return %c0_i32, %arg0, %c0_i32_0 : i32, i32, i32
  }
  func.func @transform_2(%arg0: i32) -> (i32, i32) {
    %c0_i32 = arith.constant 0 : i32
    %c0_i32_0 = arith.constant 0 : i32
    return %arg0, %c0_i32 : i32, i32
  }
}

</mosaic_0001>

<bundles_post_ra>
// kernel: tpu_custom_call.1
= control target key start
LH: loop header
LB: loop body
LE: loop exit
PB: predicated region body
PF: predicated region fallthrough
CT: control target
= control target key end

     0   :  { %s2597_s0 = inlined_call_operand.hbm [shape: f32[200], index: 0, kind: input, shape index: {}]   ;;  %s2598_s1 = inlined_call_operand.hbm [shape: f32[16,8,128], index: 1, kind: input, shape index: {}]   ;;  %s2599_s2 = inlined_call_operand.hbm [shape: f32[8,128], index: 2, kind: output, shape index: {}]  }
   0x1   :  { %2607 = sst [smem:[#allocation21_spill]] %s2599_s2 }
   0x2   :  { %7 = vsyncpa [#allocation5], 0 }
   0x3   :  { %8 = vsyncpa [#allocation3], 0 }
   0x4   :  { %9 = vsyncpa [#allocation4], 0  ;;  %s1423_s9 = smov [#allocation2]   ;;  %s1424_s12 = smov [#allocation6]  }
   0x5   :  { %17 = dma.hbm_to_smem %s2597_s0, 32, %s1423_s9, [#allocation5]  }
   0x6   :  { %s23_s13 = sshll.u32 %s1424_s12, 4  ;;  %s24_s13 = int_to_ptr.vmem [resolvable:$true] %s23_s13 }
   0x7   :  { %s1385_s14 = scalar_lea.vmem %s24_s13, 2048  ;;  %p1390_p1 = scmp.lt.s32.totalorder %s24_s13, %s24_s13 }
   0x8   :  { %p1386_p0 = scmp.ne.s32.totalorder %s24_s13, %s1385_s14  ;;  %p1391_p2 = scmp.lt.s32.totalorder %s1385_s14, %s1385_s14 }
   0xa   :  { %p1392_p3 = por %p1391_p2, %p1390_p1 }
   0xc   :  { %p1393_p4 = pnand %p1392_p3, %p1386_p0 }
   0xe   :  { %1396 = shalt.err (!%p1393_p4)
}
   0xf   :  { %s1425_s15 = smov 128   ;;  %s1426_s16 = smov 8  }
  0x10   :  { %29 = dma.hbm_to_vmem [thread:$0]  %s2598_s1, 2048, %s24_s13, [#allocation3], %s1425_s15, %s1425_s15, %s1426_s16  }
  0x11   :  { %1417 = dma.done.wait [#allocation5], 32  }
  0x12   :  { %1418 = vsyncadd [#allocation5], 4294967264 }
  0x13   :  { %1419 = dma.done.wait [#allocation3], 2048  }
  0x14   :  { %1420 = vsyncadd [#allocation3], 4294965248 }
  0x15   :  { %36 = sfence }
  0x16   :  { %s80_s0 = sld [smem:[#allocation2]]  ;;  %v1455_v0 = vld [vmem:[#allocation6 + $0x28] sm:$0xff]  ;;  %v1457_v1 = vld [vmem:[#allocation6 + $0x50] sm:$0xff]  ;;  %v1463_v4 = vld [vmem:[#allocation6 + $0x58] sm:$0xff] }
  0x17   :  { %s1095_s19 = sld [smem:[#allocation2 + $0x1]]  ;;  %v1461_v3 = vld [vmem:[#allocation6 + $0x30] sm:$0xff]  ;;  %v1469_v8 = vld [vmem:[#allocation6 + $0x38] sm:$0xff]  ;;  %v1471_v9 = vld [vmem:[#allocation6 + $0x60] sm:$0xff] }
  0x18   :  { %s1096_s20 = sld [smem:[#allocation2 + $0x2]]  ;;  %v1477_v13 = vld [vmem:[#allocation6 + $0x40] sm:$0xff]  ;;  %v1484_v17 = vld [vmem:[#allocation6 + $0x48] sm:$0xff]  ;;  %v1496_v25 = vld [vmem:[#allocation6 + $0x70] sm:$0xff] }
  0x19   :  { %s1449_s21 = sld [smem:[#allocation2 + $0x3]]  ;;  %v1486_v18 = vld [vmem:[#allocation6 + $0x68] sm:$0xff] }
  0x1a   :  { %s1451_s22 = sld [smem:[#allocation2 + $0x4]] }
  0x1b   :  { %s1453_s23 = sld [smem:[#allocation2 + $0x19]] }
  0x1c   :  { %s1459_s24 = sld [smem:[#allocation2 + $0x1e]]  ;;  %v92_v2 = vstv %s80_s0 }
  0x1d   :  { %s1465_s1 = sld [smem:[#allocation2 + $0x1f]]  ;;  %v93_v5 = vmul.f32 %v92_v2, %v1455_v0  ;;  %v96_v6 = vstv %s1095_s19  ;;  %v136_v7 = vmul.f32 %v92_v2, %v1457_v1 }
  0x1e   :  { %s1473_s25 = sld [smem:[#allocation2 + $0x20]]  ;;  %v97_v10 = vmul.f32 %v96_v6, %v1461_v3  ;;  %v102_v11 = vstv %s1096_s20  ;;  %v138_v12 = vmul.f32 %v96_v6, %v1463_v4 }
  0x1f   :  { %s1479_s26 = sld [smem:[#allocation2 + $0x21]]  ;;  %v103_v14 = vmul.f32 %v102_v11, %v1469_v8  ;;  %v108_v15 = vstv %s1449_s21  ;;  %v142_v16 = vmul.f32 %v102_v11, %v1471_v9 }
  0x20   :  { %s1488_s27 = sld [smem:[#allocation2 + $0x22]]  ;;  %v98_v19 = vadd.f32 %v97_v10, %v93_v5  ;;  %v109_v20 = vmul.f32 %v108_v15, %v1477_v13  ;;  %v114_v21 = vstv %s1451_s22  ;;  %v139_v22 = vadd.f32 %v138_v12, %v136_v7 }
  0x21   :  { %s1492_s28 = sld [smem:[#allocation2 + $0x37]]  ;;  %v115_v23 = vmul.f32 %v114_v21, %v1484_v17  ;;  %v146_v24 = vmul.f32 %v108_v15, %v1486_v18  ;;  %v120_v28 = vstv %s1453_s23  ;;  %v150_v33 = vmul.f32 %v114_v21, %v1496_v25 }
  0x22   :  { %v94_v26 = vstv %s1459_s24  ;;  %v104_v27 = vadd.f32 %v103_v14, %v98_v19  ;;  %v143_v29 = vadd.f32 %v142_v16, %v139_v22  ;;  %s1500_s29 = sld [smem:[#allocation2 + $0x5]] }
  0x23   :  { %v95_v30 = vmul.f32 %v94_v26, %v1455_v0  ;;  %v99_v31 = vstv %s1465_s1  ;;  %v137_v32 = vmul.f32 %v94_v26, %v1457_v1  ;;  %s1506_s30 = sld [smem:[#allocation2 + $0x6]] }
  0x24   :  { %v100_v34 = vmul.f32 %v99_v31, %v1461_v3  ;;  %v105_v35 = vstv %s1473_s25  ;;  %v110_v36 = vadd.f32 %v109_v20, %v104_v27  ;;  %v140_v37 = vmul.f32 %v99_v31, %v1463_v4  ;;  %s1511_s3 = sld [smem:[#allocation2 + $0x7]] }
  0x25   :  { %v106_v38 = vmul.f32 %v105_v35, %v1469_v8  ;;  %v111_v39 = vstv %s1479_s26  ;;  %v144_v40 = vmul.f32 %v105_v35, %v1471_v9  ;;  %v147_v41 = vadd.f32 %v146_v24, %v143_v29  ;;  %s1516_s4 = sld [smem:[#allocation2 + $0x8]] }
  0x26   :  { %v101_v42 = vadd.f32 %v100_v34, %v95_v30  ;;  %v112_v43 = vmul.f32 %v111_v39, %v1477_v13  ;;  %v116_v44 = vadd.f32 %v115_v23, %v110_v36  ;;  %v117_v45 = vstv %s1488_s27  ;;  %s1520_s5 = sld [smem:[#allocation2 + $0x9]] }
  0x27   :  { %v141_v46 = vadd.f32 %v140_v37, %v137_v32  ;;  %v148_v47 = vmul.f32 %v111_v39, %v1486_v18  ;;  %s1523_s6 = sld [smem:[#allocation2 + $0x1a]]  ;;  %v118_v49 = vmul.f32 %v117_v45, %v1484_v17  ;;  %v151_v51 = vadd.f32 %v150_v33, %v147_v41 }
  0x28   :  { %v107_v48 = vadd.f32 %v106_v38, %v101_v42  ;;  %v1526_v50 = vadd.f32 %v120_v28, %v116_v44  ;;  %s1528_s7 = sld [smem:[#allocation2 + $0x23]]  ;;  %v152_v53 = vmul.f32 %v117_v45, %v1496_v25  ;;  %v180_v54 = vstv %s1500_s29 }
  0x29   :  { %v145_v52 = vadd.f32 %v144_v40, %v141_v46  ;;  %s1531_s8 = sld [smem:[#allocation2 + $0x24]]  ;;  %v184_v55 = vstv %s1506_s30  ;;  %v122_v57 = vstv %s1492_s28  ;;  %v181_v58 = vmul.f32 %v180_v54, %v1455_v0 }
  0x2a   :  { %v113_v56 = vadd.f32 %v112_v43, %v107_v48  ;;  %s1536_s9 = sld [smem:[#allocation2 + $0x25]]  ;;  %v185_v60 = vmul.f32 %v184_v55, %v1461_v3  ;;  %v190_v61 = vstv %s1511_s3  ;;  %v127_v2 = vsub.f32 1.0, %v1526_v50 }
  0x2b   :  { %v149_v59 = vadd.f32 %v148_v47, %v145_v52  ;;  %s1539_s10 = sld [smem:[#allocation2 + $0x26]]  ;;  %v196_v62 = vstv %s1516_s4  ;;  %v1545_v5 = vadd.f32 %v151_v51, %v120_v28  ;;  %v191_v6 = vmul.f32 %v190_v61, %v1469_v8 }
  0x2c   :  { %v119_v63 = vadd.f32 %v118_v49, %v113_v56  ;;  %s1547_s11 = sld [smem:[#allocation2 + $0x27]]  ;;  %v186_v10 = vadd.f32 %v185_v60, %v181_v58  ;;  %v197_v11 = vmul.f32 %v196_v62, %v1477_v13  ;;  %v202_v12 = vstv %s1520_s5 }
  0x2d   :  { %v153_v7 = vadd.f32 %v152_v53, %v149_v59  ;;  %s1550_s12 = sld [smem:[#allocation2 + $0x38]]  ;;  %v203_v16 = vmul.f32 %v202_v12, %v1484_v17  ;;  %v224_v19 = vmul.f32 %v180_v54, %v1457_v1  ;;  %v159_v38 = vsub.f32 1.0, %v1545_v5 }
  0x2e   :  { %v123_v14 = vadd.f32 %v122_v57, %v119_v63  ;;  %v182_v15 = vstv %s1528_s7  ;;  %s1557_s13 = sld [smem:[#allocation2 + $0xa]]  ;;  %v192_v23 = vadd.f32 %v191_v6, %v186_v10  ;;  %v208_v40 = vstv %s1523_s6 }
  0x2f   :  { %v155_v20 = vadd.f32 %v153_v7, %v122_v57  ;;  %v183_v21 = vmul.f32 %v182_v15, %v1455_v0  ;;  %v187_v22 = vstv %s1531_s8  ;;  %s1561_s14 = sld [smem:[#allocation2 + $0xb]]  ;;  %v225_v28 = vmul.f32 %v182_v15, %v1457_v1 }
  0x30   :  { %v124_v24 = vmul.f32 %v123_v14, %v123_v14  ;;  %v188_v26 = vmul.f32 %v187_v22, %v1461_v3  ;;  %v193_v27 = vstv %s1536_s9  ;;  %s1566_s15 = sld [smem:[#allocation2 + $0xc]]  ;;  %v198_v31 = vadd.f32 %v197_v11, %v192_v23 }
  0x31   :  { %v156_v29 = vmul.f32 %v155_v20, %v155_v20  ;;  %v194_v30 = vmul.f32 %v193_v27, %v1469_v8  ;;  %v199_v32 = vstv %s1539_s10  ;;  %s1570_s16 = sld [smem:[#allocation2 + $0xd]]  ;;  %v226_v42 = vmul.f32 %v184_v55, %v1463_v4 }
  0x32   :  { %v125_v33 = vadd.f32 0.2, %v124_v24  ;;  %v189_v34 = vadd.f32 %v188_v26, %v183_v21  ;;  %v200_v35 = vmul.f32 %v199_v32, %v1477_v13  ;;  %v205_v36 = vstv %s1547_s11  ;;  %s1574_s17 = sld [smem:[#allocation2 + $0xe]] }
  0x33   :  { %v157_v37 = vadd.f32 0.2, %v156_v29  ;;  %v206_v39 = vmul.f32 %v205_v36, %v1484_v17  ;;  %s1579_s18 = sld [smem:[#allocation2 + $0x1b]]  ;;  %v228_v43 = vmul.f32 %v187_v22, %v1463_v4  ;;  %v204_v44 = vadd.f32 %v203_v16, %v198_v31 }
  0x34   :  { %1299 = vrcp.f32 %v125_v33  ;;  %v195_v41 = vadd.f32 %v194_v30, %v189_v34  ;;  %s1583_s0 = sld [smem:[#allocation2 + $0x28]]  ;;  %v230_v45 = vmul.f32 %v190_v61, %v1471_v9  ;;  %v232_v46 = vmul.f32 %v193_v27, %v1471_v9 }
  0x35   :  { %1301 = vrcp.f32 %v157_v37  ;;  %s1587_s19 = sld [smem:[#allocation2 + $0x29]]  ;;  %v227_v48 = vadd.f32 %v226_v42, %v224_v19  ;;  %v229_v49 = vadd.f32 %v228_v43, %v225_v28  ;;  %v234_v51 = vmul.f32 %v196_v62, %v1486_v18 }
  0x36   :  { %v201_v47 = vadd.f32 %v200_v35, %v195_v41  ;;  %s1590_s20 = sld [smem:[#allocation2 + $0x2a]]  ;;  %v210_v52 = vstv %s1550_s12  ;;  %v236_v53 = vmul.f32 %v199_v32, %v1486_v18  ;;  %v238_v54 = vmul.f32 %v202_v12, %v1496_v25 }
  0x37   :  { %v240_v55 = vmul.f32 %v205_v36, %v1496_v25  ;;  %s1596_s21 = sld [smem:[#allocation2 + $0x2b]]  ;;  %v231_v57 = vadd.f32 %v230_v45, %v227_v48  ;;  %v233_v58 = vadd.f32 %v232_v46, %v229_v49  ;;  %v268_v59 = vstv %s1557_s13 }
  0x38   :  { %v207_v56 = vadd.f32 %v206_v39, %v201_v47  ;;  %s1598_s22 = sld [smem:[#allocation2 + $0x2c]]  ;;  %v269_v60 = vmul.f32 %v268_v59, %v1455_v0  ;;  %v272_v61 = vstv %s1561_s14  ;;  %v278_v62 = vstv %s1566_s15 }
  0x39   :  { %s1601_s23 = sld [smem:[#allocation2 + $0x39]]  ;;  %v284_v63 = vstv %s1570_s16  ;;  %v235_v7 = vadd.f32 %v234_v51, %v231_v57  ;;  %v237_v10 = vadd.f32 %v236_v53, %v233_v58  ;;  %v273_v14 = vmul.f32 %v272_v61, %v1461_v3 }
  0x3a   :  { %v211_v6 = vadd.f32 %v210_v52, %v207_v56  ;;  %v270_v11 = vstv %s1583_s0  ;;  %s1608_s24 = sld [smem:[#allocation2 + $0xf]]  ;;  %v279_v16 = vmul.f32 %v278_v62, %v1469_v8  ;;  %v1620_v19 = vadd.f32 %v208_v40, %v204_v44 }
  0x3b   :  { %v271_v12 = vmul.f32 %v270_v11, %v1455_v0  ;;  %v275_v15 = vstv %s1587_s19  ;;  %s1616_s1 = sld [smem:[#allocation2 + $0x10]]  ;;  %v241_v21 = vadd.f32 %v240_v55, %v237_v10  ;;  %v239_v23 = vadd.f32 %v238_v54, %v235_v7 }
  0x3c   :  { %v212_v20 = vmul.f32 %v211_v6, %v211_v6  ;;  %v276_v22 = vmul.f32 %v275_v15, %v1461_v3  ;;  %s1623_s25 = sld [smem:[#allocation2 + $0x11]]  ;;  %v274_v24 = vadd.f32 %v273_v14, %v269_v60  ;;  %v281_v26 = vstv %s1590_s20 }
  0x3d   :  { %v287_v27 = vstv %s1596_s21  ;;  %s1627_s26 = sld [smem:[#allocation2 + $0x12]]  ;;  %v243_v29 = vadd.f32 %v241_v21, %v210_v52  ;;  %v285_v31 = vmul.f32 %v284_v63, %v1477_v13  ;;  %v282_v33 = vmul.f32 %v281_v26, %v1469_v8 }
  0x3e   :  { %v213_v28 = vadd.f32 0.2, %v212_v20  ;;  %v277_v30 = vadd.f32 %v276_v22, %v271_v12  ;;  %s1632_s27 = sld [smem:[#allocation2 + $0x13]]  ;;  %v280_v32 = vadd.f32 %v279_v16, %v274_v24  ;;  %v288_v34 = vmul.f32 %v287_v27, %v1477_v13 }
  0x3f   :  { %v290_v35 = vstv %s1574_s17  ;;  %s1637_s28 = sld [smem:[#allocation2 + $0x1c]]  ;;  %v215_v36 = vsub.f32 2.0, %v1620_v19  ;;  %v244_v37 = vmul.f32 %v243_v29, %v243_v29  ;;  %v1646_v41 = vadd.f32 %v239_v23, %v208_v40 }
  0x40   :  { %1303 = vrcp.f32 %v213_v28  ;;  %s1640_s29 = sld [smem:[#allocation2 + $0x2d]]  ;;  %v283_v42 = vadd.f32 %v282_v33, %v277_v30  ;;  %v291_v43 = vmul.f32 %v290_v35, %v1484_v17  ;;  %v293_v44 = vstv %s1598_s22 }
  0x41   :  { %v1642_v39 = vpop.eup %1299  ;;  %s1650_s30 = sld [smem:[#allocation2 + $0x2e]]  ;;  %v245_v47 = vadd.f32 0.2, %v244_v37  ;;  %v286_v48 = vadd.f32 %v285_v31, %v280_v32  ;;  %v294_v49 = vmul.f32 %v293_v44, %v1484_v17  ;;  %v298_v52 = vstv %s1601_s23 }
  0x42   :  { %v1652_v45 = vpop.eup %1301  ;;  %v128_v46 = vmul.f32 %v1642_v39, %v127_v2  ;;  %s1658_s3 = sld [smem:[#allocation2 + $0x2f]]  ;;  %v289_v51 = vadd.f32 %v288_v34, %v283_v42  ;;  %v312_v53 = vmul.f32 %v268_v59, %v1457_v1  ;;  %v313_v2 = vmul.f32 %v270_v11, %v1457_v1 }
  0x43   :  { %v160_v40 = vmul.f32 %v1652_v45, %v159_v38  ;;  %s1665_s4 = sld [smem:[#allocation2 + $0x30]]  ;;  %1305 = vrcp.f32 %v245_v47  ;;  %v314_v54 = vmul.f32 %v272_v61, %v1463_v4  ;;  %v247_v5 = vsub.f32 2.0, %v1646_v41 }
  0x44   :  { %v129_v50 = vmul.f32 1.442695, %v128_v46  ;;  %s1669_s5 = sld [smem:[#allocation2 + $0x31]]  ;;  %v295_v38 = vadd.f32 %v294_v49, %v289_v51  ;;  %v316_v56 = vmul.f32 %v275_v15, %v1463_v4  ;;  %v318_v58 = vmul.f32 %v278_v62, %v1471_v9 }
  0x45   :  { %v161_v55 = vmul.f32 1.442695, %v160_v40  ;;  %s1673_s6 = sld [smem:[#allocation2 + $0x3a]]  ;;  %v315_v57 = vadd.f32 %v314_v54, %v312_v53  ;;  %v320_v59 = vmul.f32 %v281_v26, %v1471_v9  ;;  %v296_v60 = vstv %s1579_s18 }
  0x46   :  { %1307 = vpow2.f32 %v129_v50  ;;  %s1679_s7 = sld [smem:[#allocation2 + $0x14]]  ;;  %v299_v61 = vadd.f32 %v298_v52, %v295_v38  ;;  %v317_v6 = vadd.f32 %v316_v56, %v313_v2  ;;  %v292_v7 = vadd.f32 %v291_v43, %v286_v48 }
  0x47   :  { %1309 = vpow2.f32 %v161_v55  ;;  %s1682_s8 = sld [smem:[#allocation2 + $0x15]]  ;;  %v319_v10 = vadd.f32 %v318_v58, %v315_v57  ;;  %v322_v62 = vmul.f32 %v284_v63, %v1486_v18  ;;  %v324_v11 = vmul.f32 %v287_v27, %v1486_v18 }
  0x48   :  { %s1688_s9 = sld [smem:[#allocation2 + $0x16]]  ;;  %v300_v12 = vmul.f32 %v299_v61, %v299_v61  ;;  %v321_v14 = vadd.f32 %v320_v59, %v317_v6  ;;  %v328_v15 = vmul.f32 %v293_v44, %v1496_v25  ;;  %v356_v16 = vstv %s1608_s24 }
  0x49   :  { %s1692_s10 = sld [smem:[#allocation2 + $0x17]]  ;;  %v326_v20 = vmul.f32 %v290_v35, %v1496_v25  ;;  %v357_v63 = vmul.f32 %v356_v16, %v1455_v0  ;;  %v358_v21 = vstv %s1640_s29  ;;  %v360_v22 = vstv %s1616_s1 }
  0x4a   :  { %s1700_s11 = sld [smem:[#allocation2 + $0x18]]  ;;  %v301_v23 = vadd.f32 0.2, %v300_v12  ;;  %v325_v24 = vadd.f32 %v324_v11, %v321_v14  ;;  %v359_v26 = vmul.f32 %v358_v21, %v1455_v0  ;;  %v361_v27 = vmul.f32 %v360_v22, %v1461_v3 }
  0x4b   :  { %s1708_s12 = sld [smem:[#allocation2 + $0x1d]]  ;;  %v323_v28 = vadd.f32 %v322_v62, %v319_v10  ;;  %v363_v29 = vstv %s1650_s30  ;;  %v366_v30 = vstv %s1623_s25  ;;  %v369_v31 = vstv %s1658_s3 }
  0x4c   :  { %s1713_s13 = sld [smem:[#allocation2 + $0x32]]  ;;  %1311 = vrcp.f32 %v301_v23  ;;  %v329_v33 = vadd.f32 %v328_v15, %v325_v24  ;;  %v362_v34 = vadd.f32 %v361_v27, %v357_v63  ;;  %v364_v35 = vmul.f32 %v363_v29, %v1461_v3 }
  0x4d   :  { %v1715_v32 = vpop.eup %1303  ;;  %s1718_s14 = sld [smem:[#allocation2 + $0x33]]  ;;  %v1725_v42 = vadd.f32 %v296_v60, %v292_v7  ;;  %v367_v43 = vmul.f32 %v366_v30, %v1469_v8  ;;  %v370_v44 = vmul.f32 %v369_v31, %v1469_v8  ;;  %v372_v48 = vstv %s1627_s26 }
  0x4e   :  { %v216_v37 = vmul.f32 %v1715_v32, %v215_v36  ;;  %s1733_s15 = sld [smem:[#allocation2 + $0x34]]  ;;  %v331_v46 = vadd.f32 %v329_v33, %v298_v52  ;;  %v365_v47 = vadd.f32 %v364_v35, %v359_v26  ;;  %v375_v49 = vstv %s1665_s4 }
  0x4f   :  { %s1737_s16 = sld [smem:[#allocation2 + $0x35]]  ;;  %v327_v36 = vadd.f32 %v326_v20, %v323_v28  ;;  %v368_v40 = vadd.f32 %v367_v43, %v362_v34  ;;  %v373_v51 = vmul.f32 %v372_v48, %v1477_v13  ;;  %v376_v52 = vmul.f32 %v375_v49, %v1477_v13 }
  0x50   :  { %v217_v19 = vmul.f32 1.442695, %v216_v37  ;;  %s1742_s17 = sld [smem:[#allocation2 + $0x36]]  ;;  %v1744_v53 = vpop.eup %1305  ;;  %v332_v50 = vmul.f32 %v331_v46, %v331_v46  ;;  %v371_v2 = vadd.f32 %v370_v44, %v365_v47  ;;  %v378_v54 = vstv %s1632_s27 }
  0x51   :  { %s1748_s0 = sld [smem:[#allocation2 + $0x3b]]  ;;  %v248_v55 = vmul.f32 %v1744_v53, %v247_v5  ;;  %v374_v38 = vadd.f32 %v373_v51, %v368_v40  ;;  %v379_v56 = vmul.f32 %v378_v54, %v1484_v17  ;;  %v381_v61 = vstv %s1669_s5 }
  0x52   :  { %1313 = vpow2.f32 %v217_v19  ;;  %s1756_s19 = sld [smem:[#allocation2 + $0x3c]]  ;;  %v333_v58 = vadd.f32 0.2, %v332_v50  ;;  %v377_v59 = vadd.f32 %v376_v52, %v371_v2  ;;  %v303_v5 = vsub.f32 3.0, %v1725_v42 }
  0x53   :  { %v1758_v57 = vpop.eup %1307  ;;  %s1761_s20 = sld [smem:[#allocation2 + $0x3d]]  ;;  %v249_v41 = vmul.f32 1.442695, %v248_v55  ;;  %v1770_v7 = vadd.f32 %v327_v36, %v296_v60  ;;  %v382_v10 = vmul.f32 %v381_v61, %v1484_v17  ;;  %v380_v11 = vadd.f32 %v379_v56, %v374_v38 }
  0x54   :  { %v1763_v6 = vpop.eup %1309  ;;  %s1765_s21 = sld [smem:[#allocation2 + $0x3e]]  ;;  %1315 = vrcp.f32 %v333_v58  ;;  %v131_v62 = vsub.f32 0.0, %v1758_v57  ;;  %v386_v12 = vstv %s1673_s6  ;;  %v384_v60 = vstv %s1637_s28 }
  0x55   :  { %s1773_s22 = sld [smem:[#allocation2 + $0x3f]]  ;;  %1317 = vpow2.f32 %v249_v41  ;;  %v163_v14 = vsub.f32 0.0, %v1763_v6  ;;  %v383_v15 = vadd.f32 %v382_v10, %v377_v59  ;;  %v401_v20 = vmul.f32 %v358_v21, %v1457_v1 }
  0x56   :  { %s1777_s23 = sld [smem:[#allocation2 + $0x40]]  ;;  %v400_v63 = vmul.f32 %v356_v16, %v1457_v1  ;;  %v402_v23 = vmul.f32 %v360_v22, %v1463_v4  ;;  %v404_v24 = vmul.f32 %v363_v29, %v1463_v4  ;;  %v335_v26 = vsub.f32 3.0, %v1770_v7 }
  0x57   :  { %s1784_s18 = sld [smem:[#allocation2 + $0x55]]  ;;  %v387_v27 = vadd.f32 %v386_v12, %v383_v15  ;;  %v408_v21 = vmul.f32 %v369_v31, %v1471_v9  ;;  %v132_v28 = vmul.f32 1.442695, %v131_v62  ;;  %v1807_v22 = vadd.f32 %v384_v60, %v380_v11 }
  0x58   :  { %s1793_s30 = sld [smem:[#allocation2 + $0x56]]  ;;  %v405_v29 = vadd.f32 %v404_v24, %v401_v20  ;;  %v412_v33 = vmul.f32 %v375_v49, %v1486_v18  ;;  %v164_v34 = vmul.f32 1.442695, %v163_v14  ;;  %v406_v37 = vmul.f32 %v366_v30, %v1471_v9 }
  0x59   :  { %s1801_s29 = sld [smem:[#allocation2 + $0x57]]  ;;  %v1803_v16 = vpop.eup %1311  ;;  %v388_v31 = vmul.f32 %v387_v27, %v387_v27  ;;  %v403_v42 = vadd.f32 %v402_v23, %v400_v63  ;;  %v444_v44 = vstv %s1679_s7  ;;  %v446_v46 = vstv %s1713_s13 }
  0x5a   :  { %s1810_s24 = sld [smem:[#allocation2 + $0x58]]  ;;  %v304_v35 = vmul.f32 %v1803_v16, %v303_v5  ;;  %v409_v43 = vadd.f32 %v408_v21, %v405_v29  ;;  %v416_v19 = vmul.f32 %v381_v61, %v1496_v25  ;;  %v445_v36 = vmul.f32 %v444_v44, %v1455_v0 }
  0x5b   :  { %s1816_s1 = sld [smem:[#allocation2 + $0x59]]  ;;  %v389_v49 = vadd.f32 0.2, %v388_v31  ;;  %v447_v40 = vmul.f32 %v446_v46, %v1455_v0  ;;  %v448_v51 = vstv %s1682_s8  ;;  %v451_v50 = vstv %s1718_s14 }
  0x5c   :  { %2608 = sst [smem:[#allocation11_spill]] %s1777_s23  ;;  %v305_v47 = vmul.f32 1.442695, %v304_v35  ;;  %v413_v30 = vadd.f32 %v412_v33, %v409_v43  ;;  %v449_v52 = vmul.f32 %v448_v51, %v1461_v3  ;;  %v452_v55 = vmul.f32 %v451_v50, %v1461_v3 }
  0x5d   :  { %s1820_s3 = sld [smem:[#allocation2 + $0x6e]]  ;;  %v454_v38 = vstv %s1688_s9  ;;  %v407_v58 = vadd.f32 %v406_v37, %v403_v42  ;;  %v410_v59 = vmul.f32 %v372_v48, %v1486_v18  ;;  %v457_v11 = vstv %s1733_s15 }
  0x5e   :  { %s1826_s25 = sld [smem:[#allocation2 + $0x6f]]  ;;  %1319 = vpow2.f32 %v305_v47  ;;  %v417_v61 = vadd.f32 %v416_v19, %v413_v30  ;;  %v450_v41 = vadd.f32 %v449_v52, %v445_v36  ;;  %v455_v5 = vmul.f32 %v454_v38, %v1469_v8 }
  0x5f   :  { %s1833_s4 = sld [smem:[#allocation2 + $0x70]]  ;;  %v1835_v2 = vpop.eup %1313  ;;  %1321 = vrcp.f32 %v389_v49  ;;  %v453_v62 = vadd.f32 %v452_v55, %v447_v40  ;;  %v460_v14 = vstv %s1692_s10  ;;  %v458_v63 = vmul.f32 %v457_v11, %v1469_v8 }
  0x60   :  { %s1844_s5 = sld [smem:[#allocation2 + $0x71]]  ;;  %v219_v56 = vsub.f32 0.0, %v1835_v2  ;;  %1323 = vpow2.f32 %v132_v28  ;;  %v419_v20 = vadd.f32 %v417_v61, %v386_v12  ;;  %v411_v24 = vadd.f32 %v410_v59, %v407_v58 }
  0x61   :  { %2609 = sst [smem:[#allocation12_spill]] %s1816_s1  ;;  %v1855_v7 = vpop.eup %1315  ;;  %1325 = vpow2.f32 %v164_v34  ;;  %v414_v27 = vmul.f32 %v378_v54, %v1496_v25  ;;  %v461_v12 = vmul.f32 %v460_v14, %v1477_v13  ;;  %v459_v33 = vadd.f32 %v458_v63, %v453_v62 }
  0x62   :  { %s1850_s2 = sld [smem:[#allocation2 + $0x72]]  ;;  %v220_v10 = vmul.f32 1.442695, %v219_v56  ;;  %v1861_v48 = vpop.eup %1317  ;;  %v336_v15 = vmul.f32 %v1855_v7, %v335_v26  ;;  %v420_v28 = vmul.f32 %v419_v20, %v419_v20  ;;  %v456_v26 = vadd.f32 %v455_v5, %v450_v41 }
  0x63   :  { %s1853_s1 = sld [smem:[#allocation2 + $0x87]]  ;;  %v251_v23 = vsub.f32 0.0, %v1861_v48  ;;  %v463_v34 = vstv %s1737_s16  ;;  %v466_v35 = vstv %s1700_s11  ;;  %v391_v54 = vsub.f32 4.0, %v1807_v22 }
  0x64   :  { %s1859_s9 = sld [smem:[#allocation2 + $0x8c]]  ;;  %1327 = vpow2.f32 %v220_v10  ;;  %v337_v21 = vmul.f32 1.442695, %v336_v15  ;;  %v421_v31 = vadd.f32 0.2, %v420_v28  ;;  %v415_v37 = vadd.f32 %v414_v27, %v411_v24 }
  0x65   :  { %s1867_s26 = sld [smem:[#allocation2 + $0x8d]]  ;;  %v252_v29 = vmul.f32 1.442695, %v251_v23  ;;  %v464_v42 = vmul.f32 %v463_v34, %v1477_v13  ;;  %v469_v43 = vstv %s1742_s17  ;;  %v462_v47 = vadd.f32 %v461_v12, %v456_v26 }
  0x66   :  { %s1873_s10 = sld [smem:[#allocation2 + $0x8e]]  ;;  %1329 = vpow2.f32 %v337_v21  ;;  %v467_v49 = vmul.f32 %v466_v35, %v1484_v17  ;;  %v470_v22 = vmul.f32 %v469_v43, %v1484_v17  ;;  %v474_v36 = vstv %s1748_s0 }
  0x67   :  { %s1876_s6 = sld [smem:[#allocation2 + $0x8f]]  ;;  %1331 = vpow2.f32 %v252_v29  ;;  %v465_v19 = vadd.f32 %v464_v42, %v459_v33  ;;  %v488_v30 = vmul.f32 %v444_v44, %v1457_v1  ;;  %v489_v40 = vmul.f32 %v446_v46, %v1457_v1 }
  0x68   :  { %s1880_s15 = sld [smem:[#allocation2 + $0x90]]  ;;  %1333 = vrcp.f32 %v421_v31  ;;  %v490_v52 = vmul.f32 %v448_v51, %v1463_v4  ;;  %v492_v55 = vmul.f32 %v451_v50, %v1463_v4  ;;  %v494_v17 = vmul.f32 %v454_v38, %v1471_v9 }
  0x69   :  { %2610 = sst [smem:[#allocation13_spill]] %s1853_s1  ;;  %v496_v56 = vmul.f32 %v457_v11, %v1471_v9  ;;  %v418_v44 = vadd.f32 %v415_v37, %v384_v60  ;;  %v471_v59 = vadd.f32 %v470_v22, %v465_v19  ;;  %v472_v61 = vstv %s1708_s12 }
  0x6a   :  { %s1883_s27 = sld [smem:[#allocation2 + $0xa5]]  ;;  %v491_v51 = vadd.f32 %v490_v52, %v488_v30  ;;  %v493_v41 = vadd.f32 %v492_v55, %v489_v40  ;;  %v500_v4 = vmul.f32 %v463_v34, %v1486_v18  ;;  %v468_v38 = vadd.f32 %v467_v49, %v462_v47 }
  0x6b   :  { %s1887_s16 = sld [smem:[#allocation2 + $0xaa]]  ;;  %v1320_v58 = vpop.eup %1319  ;;  %v475_v5 = vadd.f32 %v474_v36, %v471_v59  ;;  %v498_v60 = vmul.f32 %v460_v14, %v1486_v18  ;;  %v504_v15 = vmul.f32 %v469_v43, %v1496_v25  ;;  %v134_v63 = vmul.f32 %v1758_v57, %v1642_v39 }
  0x6c   :  { %s1893_s1 = sld [smem:[#allocation2 + $0xab]]  ;;  %v1919_v1 = vpop.eup %1321  ;;  %v307_v46 = vsub.f32 0.0, %v1320_v58  ;;  %v495_v62 = vadd.f32 %v494_v17, %v491_v51  ;;  %v497_v11 = vadd.f32 %v496_v56, %v493_v41  ;;  %v222_v23 = vmul.f32 %v1835_v2, %v1715_v32 }
  0x6d   :  { %s1902_s17 = sld [smem:[#allocation2 + $0xac]]  ;;  %v1324_v50 = vpop.eup %1323  ;;  %v392_v9 = vmul.f32 %v1919_v1, %v391_v54  ;;  %v476_v18 = vmul.f32 %v475_v5, %v475_v5  ;;  %v166_v27 = vmul.f32 %v1763_v6, %v1652_v45  ;;  %v423_v28 = vsub.f32 4.0, %v418_v44 }
  0x6e   :  { %s1917_s7 = sld [smem:[#allocation2 + $0xae]]  ;;  %v308_v10 = vmul.f32 1.442695, %v307_v46  ;;  %v1326_v20 = vpop.eup %1325  ;;  %v501_v21 = vadd.f32 %v500_v4, %v497_v11  ;;  %v1943_v26 = vadd.f32 %v472_v61, %v468_v38  ;;  %v499_v32 = vadd.f32 %v498_v60, %v495_v62 }
  0x6f   :  { %s1922_s8 = sld [smem:[#allocation2 + $0xc3]]  ;;  %v393_v24 = vmul.f32 1.442695, %v392_v9  ;;  %v477_v39 = vadd.f32 0.2, %v476_v18  ;;  %v502_v57 = vmul.f32 %v466_v35, %v1496_v25  ;;  %v1952_v6 = vmul.f32 %v1324_v50, %v134_v63 }
  0x70   :  { %2611 = sst [smem:[#allocation14_spill]] %s1883_s27  ;;  %v505_v2 = vadd.f32 %v504_v15, %v501_v21  ;;  %v521_v54 = vstv %s1756_s19  ;;  %v524_v31 = vstv %s1761_s20  ;;  %v1964_v35 = vmul.f32 %v1326_v20, %v166_v27 }
  0x71   :  { %s1912_s27 = sld [smem:[#allocation2 + $0xad]]  ;;  %v1328_v14 = vpop.eup %1327  ;;  %1335 = vpow2.f32 %v393_v24  ;;  %v254_v37 = vmul.f32 %v1861_v48, %v1744_v53  ;;  %v1969_v42 = vmul.f32 %v1320_v58, %v1803_v16  ;;  %v479_v43 = vsub.f32 5.0, %v1943_v26  ;;  %v1977_v53 = vld [vmem:[#allocation6] sm:$0xff]  ;;  %v1979_v16 = vld [vmem:[#allocation6 + $0x8] sm:$0xff] }
  0x72   :  { %s1926_s28 = sld [smem:[#allocation2 + $0x41]]  ;;  %1337 = vpow2.f32 %v308_v10  ;;  %v1954_v12 = vmul.f32 %v1328_v14, %v222_v23  ;;  %v507_v34 = vadd.f32 %v505_v2, %v474_v36  ;;  %v503_v22 = vadd.f32 %v502_v57, %v499_v32  ;;  %v2021_v10 = vld [vmem:[#allocation6 + $0x18] sm:$0xff] }
  0x73   :  { %s1929_s13 = sld [smem:[#allocation2 + $0x42]]  ;;  %v1330_v45 = vpop.eup %1329  ;;  %1339 = vrcp.f32 %v477_v39  ;;  %v522_v48 = vmul.f32 %v521_v54, %v1952_v6  ;;  %v528_v30 = vstv %s1765_s21  ;;  %v532_v40 = vstv %s1773_s22 }
  0x74   :  { %s1935_s14 = sld [smem:[#allocation2 + $0x43]]  ;;  %v1332_v29 = vpop.eup %1331  ;;  %v339_v33 = vsub.f32 0.0, %v1330_v45  ;;  %v508_v19 = vmul.f32 %v507_v34, %v507_v34  ;;  %v525_v36 = vmul.f32 %v524_v31, %v1954_v12  ;;  %v560_v17 = vstv %s1820_s3  ;;  %v2054_v34 = vld [vmem:[#allocation6 + $0x50] sm:$0xff] }
  0x75   :  { %2612 = sst [smem:[#allocation15_spill]] %s1922_s8  ;;  %v1962_v25 = vpop.eup %1333  ;;  %v536_v56 = vstv %s1777_s23  ;;  %v540_v58 = vstv %s1784_s18  ;;  %v543_v44 = vstv %s1793_s30  ;;  %v563_v59 = vstv %s1826_s25 }
  0x76   :  { %s1939_s0 = sld [smem:[#allocation2 + $0x44]]  ;;  %v340_v47 = vmul.f32 1.442695, %v339_v33  ;;  %v424_v49 = vmul.f32 %v1962_v25, %v423_v28  ;;  %v509_v55 = vadd.f32 0.2, %v508_v19  ;;  %v1996_v46 = vmul.f32 %v1332_v29, %v254_v37 }
  0x77   :  { %s1945_s8 = sld [smem:[#allocation2 + $0x45]]  ;;  %v1999_v51 = vmul.f32 %v1330_v45, %v1855_v7  ;;  %v2003_v41 = vadd.f32 %v503_v22, %v472_v61  ;;  %v561_v4 = vmul.f32 %v560_v17, %v1977_v53  ;;  %v564_v50 = vmul.f32 %v563_v59, %v1979_v16  ;;  %v2012_v7 = vld [vmem:[#allocation6 + $0x10] sm:$0xff]  ;;  %v2069_v22 = vld [vmem:[#allocation6 + $0x58] sm:$0xff]  ;;  %v2081_v59 = vld [vmem:[#allocation6 + $0x60] sm:$0xff] }
  0x78   :  { %s1972_s11 = sld [smem:[#allocation2 + $0x5d]]  ;;  %1341 = vpow2.f32 %v340_v47  ;;  %v425_v52 = vmul.f32 1.442695, %v424_v49  ;;  %v583_v9 = vstv %s1859_s9  ;;  %v2014_v38 = vadd.f32 %v525_v36, %v522_v48  ;;  %v2067_v49 = vld [vmem:[#allocation6 + $0x20] sm:$0xff] }
  0x79   :  { %s1975_s19 = sld [smem:[#allocation2 + $0x5e]]  ;;  %v567_v5 = vstv %s1833_s4  ;;  %v584_v61 = vmul.f32 %v583_v9, %v1455_v0  ;;  %v586_v60 = vstv %s1867_s26  ;;  %v571_v62 = vstv %s1844_s5 }
  0x7a   :  { %2613 = sst [smem:[#allocation16_spill]] %s1935_s14  ;;  %1343 = vpow2.f32 %v425_v52  ;;  %v587_v11 = vmul.f32 %v586_v60, %v1461_v3  ;;  %v590_v15 = vstv %s1873_s10  ;;  %v594_v20 = vstv %s1876_s6  ;;  %v2076_v52 = vld [vmem:[#allocation6 + $0x48] sm:$0xff] }
  0x7b   :  { %s1950_s14 = sld [smem:[#allocation2 + $0x5a]]  ;;  %1345 = vrcp.f32 %v509_v55  ;;  %v511_v23 = vsub.f32 5.0, %v2003_v41  ;;  %v2033_v0 = vmul.f32 %v540_v58, %v1964_v35  ;;  %v547_v24 = vstv %s1801_s29 }
  0x7c   :  { %2614 = sst [smem:[#allocation17_spill]] %s1939_s0  ;;  %v591_v18 = vmul.f32 %v590_v15, %v1469_v8  ;;  %v565_v27 = vadd.f32 %v564_v50, %v561_v4  ;;  %v568_v21 = vmul.f32 %v567_v5, %v2012_v7  ;;  %v588_v28 = vadd.f32 %v587_v11, %v584_v61 }
  0x7d   :  { %2615 = sst [smem:[#allocation18_spill]] %s1945_s8  ;;  %v572_v32 = vmul.f32 %v571_v62, %v2021_v10  ;;  %v595_v8 = vmul.f32 %v594_v20, %v1477_v13  ;;  %v598_v57 = vstv %s1880_s15  ;;  %v605_v2 = vstv %s1887_s16 }
  0x7e   :  { %s1956_s0 = sld [smem:[#allocation2 + $0x5b]]  ;;  %v2029_v63 = vpop.eup %1335  ;;  %v592_v33 = vadd.f32 %v591_v18, %v588_v28  ;;  %v606_v54 = vmul.f32 %v2054_v34, %v605_v2  ;;  %v575_v13 = vstv %s1850_s2  ;;  %v608_v37 = vstv %s1893_s1 }
  0x7f   :  { %s1960_s8 = sld [smem:[#allocation2 + $0x5c]]  ;;  %v1338_v14 = vpop.eup %1337  ;;  %v395_v3 = vsub.f32 0.0, %v2029_v63  ;;  %v612_v47 = vstv %s1902_s17  ;;  %v609_v19 = vmul.f32 %v2069_v22, %v608_v37  ;;  %v551_v48 = vstv %s1810_s24 }
  0x80   :  { %2616 = sst [smem:[#allocation19_spill]] %s1972_s11  ;;  %v2043_v39 = vpop.eup %1339  ;;  %v2060_v31 = vmul.f32 %v1338_v14, %v1969_v42  ;;  %v544_v42 = vmul.f32 %v543_v44, %v1996_v46  ;;  %v596_v36 = vadd.f32 %v595_v8, %v592_v33  ;;  %v599_v55 = vmul.f32 %v2076_v52, %v598_v57 }
  0x81   :  { %2617 = sst [smem:[#allocation20_spill]] %s1975_s19  ;;  %v396_v45 = vmul.f32 1.442695, %v395_v3  ;;  %v480_v29 = vmul.f32 %v2043_v39, %v479_v43  ;;  %v569_v43 = vadd.f32 %v568_v21, %v565_v27  ;;  %v610_v58 = vadd.f32 %v609_v19, %v606_v54  ;;  %v2105_v21 = vld [vmem:[#allocation6 + $0x68] sm:$0xff] }
  0x82   :  { %s1985_s20 = sld [smem:[#allocation2 + $0x73]]  ;;  %v613_v4 = vmul.f32 %v2081_v59, %v612_v47  ;;  %v616_v44 = vstv %s1912_s27  ;;  %v576_v9 = vmul.f32 %v575_v13, %v2067_v49  ;;  %v629_v5 = vstv %s1926_s28  ;;  %v2139_v13 = vld [vmem:[#allocation6 + $0x70] sm:$0xff] }
  0x83   :  { %s1988_s19 = sld [smem:[#allocation2 + $0x74]]  ;;  %1347 = vpow2.f32 %v396_v45  ;;  %v481_v26 = vmul.f32 1.442695, %v480_v29  ;;  %v632_v61 = vstv %s1929_s13  ;;  %v529_v62 = vmul.f32 %v528_v30, %v2060_v31 }
  0x84   :  { %s1994_s11 = sld [smem:[#allocation2 + $0x75]]  ;;  %v573_v11 = vadd.f32 %v572_v32, %v569_v43  ;;  %v620_v20 = vstv %s1917_s7  ;;  %v600_v27 = vadd.f32 %v599_v55, %v596_v36  ;;  %v617_v28 = vmul.f32 %v2105_v21, %v616_v44 }
  0x85   :  { %s2005_s3 = sld [smem:[#allocation2 + $0x76]]  ;;  %v1342_v17 = vpop.eup %1341  ;;  %1349 = vpow2.f32 %v481_v26  ;;  %v614_v32 = vadd.f32 %v613_v4, %v610_v58  ;;  %v630_v8 = vmul.f32 %v629_v5, %v1952_v6  ;;  %v398_v57 = vmul.f32 %v2029_v63, %v1919_v1 }
  0x86   :  { %s2010_s18 = sld [smem:[#allocation2 + $0x77]]  ;;  %v2103_v14 = vmul.f32 %v1342_v17, %v1999_v51  ;;  %v633_v51 = vmul.f32 %v632_v61, %v1954_v12  ;;  %v545_v45 = vadd.f32 %v544_v42, %v2033_v0  ;;  %v2126_v33 = vadd.f32 %v576_v9, %v573_v11 }
  0x87   :  { %s2019_s12 = sld [smem:[#allocation2 + $0x88]]  ;;  %v1344_v60 = vpop.eup %1343  ;;  %v618_v37 = vadd.f32 %v617_v28, %v614_v32  ;;  %v651_v19 = vstv %s1956_s0  ;;  %v655_v32 = vstv %s1960_s8 }
  0x88   :  { %s2027_s30 = sld [smem:[#allocation2 + $0x91]]  ;;  %v2100_v18 = vpop.eup %1345  ;;  %v427_v3 = vsub.f32 0.0, %v1344_v60  ;;  %v2132_v1 = vmul.f32 %v1344_v60, %v1962_v25  ;;  %v548_v63 = vmul.f32 %v547_v24, %v2103_v14  ;;  %v634_v47 = vadd.f32 %v633_v51, %v630_v8 }
  0x89   :  { %s2037_s25 = sld [smem:[#allocation2 + $0x92]]  ;;  %v512_v30 = vmul.f32 %v2100_v18, %v511_v23  ;;  %v2124_v23 = vadd.f32 %v529_v62, %v2014_v38  ;;  %v621_v38 = vmul.f32 %v2139_v13, %v620_v20  ;;  %v648_v25 = vstv %s1950_s14 }
  0x8a   :  { %s2041_s4 = sld [smem:[#allocation2 + $0x93]]  ;;  %v428_v2 = vmul.f32 1.442695, %v427_v3  ;;  %v668_v24 = vstv %s1985_s20  ;;  %v671_v43 = vstv %s1988_s19  ;;  %v675_v55 = vstv %s1994_s11 }
  0x8b   :  { %s2049_s5 = sld [smem:[#allocation2 + $0x94]]  ;;  %v513_v41 = vmul.f32 1.442695, %v512_v30  ;;  %v669_v42 = vmul.f32 %v668_v24, %v1977_v53  ;;  %v672_v36 = vmul.f32 %v671_v43, %v1979_v16  ;;  %v2158_v58 = vadd.f32 %v548_v63, %v545_v45  ;;  %v2184_v45 = vld [vmem:[#allocation6 + $0x30] sm:$0xff] }
  0x8c   :  { %s2057_s9 = sld [smem:[#allocation2 + $0x95]]  ;;  %v676_v44 = vmul.f32 %v675_v55, %v2012_v7  ;;  %v679_v9 = vstv %s2005_s3  ;;  %v622_v5 = vadd.f32 %v621_v38, %v618_v37  ;;  %v649_v60 = vmul.f32 %v648_v25, %v1964_v35 }
  0x8d   :  { %s2065_s26 = sld [smem:[#allocation2 + $0xa6]]  ;;  %1351 = vpow2.f32 %v513_v41  ;;  %v673_v62 = vadd.f32 %v672_v36, %v669_v42  ;;  %v652_v20 = vmul.f32 %v651_v19, %v1996_v46  ;;  %v680_v8 = vmul.f32 %v679_v9, %v2021_v10  ;;  %v2203_v36 = vld [vmem:[#allocation6 + $0x38] sm:$0xff] }
  0x8e   :  { %s2072_s6 = sld [smem:[#allocation2 + $0xaf]]  ;;  %1353 = vpow2.f32 %v428_v2  ;;  %v691_v3 = vstv %s2027_s30  ;;  %v2181_v2 = vld [vmem:[#allocation6 + $0x28] sm:$0xff]  ;;  %v683_v25 = vstv %s2010_s18  ;;  %v656_v42 = vmul.f32 %v655_v32, %v2103_v14 }
  0x8f   :  { %s2079_s2 = sld [smem:[#allocation2 + $0xb0]]  ;;  %v677_v51 = vadd.f32 %v676_v44, %v673_v62  ;;  %v653_v19 = vadd.f32 %v652_v20, %v649_v60 }
  0x90   :  { %s2619_s1 = sld [smem:[#allocation14_spill]]  ;;  %v1348_v17 = vpop.eup %1347  ;;  %v698_v63 = vstv %s2041_s4 }
  0x91   :  { %s2085_s15 = sld [smem:[#allocation2 + $0xb1]]  ;;  %v699_v55 = vmul.f32 %v2203_v36, %v698_v63 }
  0x92   :  { %s2091_s16 = sld [smem:[#allocation2 + $0xb2]]  ;;  %v1350_v11 = vpop.eup %1349  ;;  %v706_v44 = vstv %s2057_s9 }
  0x93   :  { %s2098_s17 = sld [smem:[#allocation2 + $0xb3]]  ;;  %v483_v28 = vsub.f32 0.0, %v1350_v11  ;;  %v486_v20 = vmul.f32 %v1350_v11, %v2043_v39 }
  0x94   :  { %s2621_s27 = sld [smem:[#allocation15_spill]] }
  0x95   :  { %s2108_s21 = sld [smem:[#allocation2 + $0xc4]]  ;;  %v484_v38 = vmul.f32 1.442695, %v483_v28  ;;  %v716_v60 = vstv %s2079_s2  ;;  %v2225_v28 = vadd.f32 %v656_v42, %v653_v19 }
  0x96   :  { %v602_v15 = vstv %s2619_s1  ;;  %s2115_s7 = sld [smem:[#allocation2 + $0x46]] }
  0x97   :  { %s2623_s28 = sld [smem:[#allocation16_spill]]  ;;  %v2137_v0 = vadd.f32 %v602_v15, %v600_v27  ;;  %v2169_v15 = vmul.f32 %v1348_v17, %v398_v57  ;;  %v694_v27 = vstv %s2037_s25  ;;  %v692_v57 = vmul.f32 %v2181_v2, %v691_v3 }
  0x98   :  { %s2121_s13 = sld [smem:[#allocation2 + $0x47]]  ;;  %v695_v41 = vmul.f32 %v2184_v45, %v694_v27  ;;  %1355 = vpow2.f32 %v484_v38  ;;  %v684_v17 = vmul.f32 %v683_v25, %v2067_v49  ;;  %v717_v38 = vmul.f32 %v2069_v22, %v716_v60 }
  0x99   :  { %s2129_s1 = sld [smem:[#allocation2 + $0x48]]  ;;  %v533_v24 = vmul.f32 %v532_v40, %v2169_v15  ;;  %v681_v40 = vadd.f32 %v680_v8, %v677_v51  ;;  %v720_v25 = vstv %s2085_s15  ;;  %v724_v42 = vstv %s2091_s16 }
  0x9a   :  { %v624_v54 = vstv %s2621_s27  ;;  %s2142_s23 = sld [smem:[#allocation2 + $0x49]]  ;;  %v1352_v62 = vpop.eup %1351 }
  0x9b   :  { %2622 = sst [smem:[#allocation14_spill]] %s2108_s21  ;;  %v2190_v37 = vadd.f32 %v624_v54, %v622_v5  ;;  %v2221_v3 = vadd.f32 %v533_v24, %v2124_v23  ;;  %v1354_v32 = vpop.eup %1353  ;;  %v515_v8 = vsub.f32 0.0, %v1352_v62  ;;  %v707_v23 = vmul.f32 %v2076_v52, %v706_v44 }
  0x9c   :  { %s2145_s27 = sld [smem:[#allocation2 + $0x4a]]  ;;  %v2235_v11 = vadd.f32 %v684_v17, %v681_v40  ;;  %v738_v24 = vstv %s2115_s7  ;;  %v2248_v19 = vmul.f32 %v1354_v32, %v2132_v1  ;;  %v2260_v44 = vmul.f32 %v2081_v59, %v720_v25 }
  0x9d   :  { %v636_v26 = vstv %s2623_s28  ;;  %s2624_s29 = sld [smem:[#allocation17_spill]]  ;;  %v518_v32 = vmul.f32 %v1352_v62, %v2100_v18 }
  0x9e   :  { %s2150_s10 = sld [smem:[#allocation2 + $0x5f]]  ;;  %v637_v4 = vmul.f32 %v636_v26, %v2060_v31  ;;  %v552_v18 = vmul.f32 %v551_v48, %v2248_v19 }
  0x9f   :  { %s2156_s21 = sld [smem:[#allocation2 + $0x60]] }
  0xa0   :  { %s2625_s14 = sld [smem:[#allocation18_spill]]  ;;  %v638_v26 = vadd.f32 %v637_v4, %v634_v47  ;;  %v696_v47 = vadd.f32 %v695_v41, %v692_v57  ;;  %v702_v4 = vstv %s2049_s5  ;;  %v2229_v57 = vld [vmem:[#allocation6 + $0x40] sm:$0xff] }
  0xa1   :  { %s2163_s0 = sld [smem:[#allocation2 + $0x61]]  ;;  %v703_v39 = vmul.f32 %v2229_v57, %v702_v4  ;;  %v745_v4 = vstv %s2129_s1 }
  0xa2   :  { %s2167_s11 = sld [smem:[#allocation2 + $0x62]]  ;;  %v700_v51 = vadd.f32 %v699_v55, %v696_v47  ;;  %v728_v47 = vstv %s2098_s17  ;;  %v739_v55 = vmul.f32 %v738_v24, %v1952_v6  ;;  %v746_v1 = vmul.f32 %v745_v4, %v2060_v31 }
  0xa3   :  { %v640_v61 = vstv %s2624_s29  ;;  %s2174_s19 = sld [smem:[#allocation2 + $0x63]]  ;;  %v2277_v25 = vmul.f32 %v2139_v13, %v728_v47 }
  0xa4   :  { %s2179_s20 = sld [smem:[#allocation2 + $0x78]]  ;;  %v641_v43 = vmul.f32 %v640_v61, %v2169_v15  ;;  %v713_v61 = vstv %s2072_s6  ;;  %v704_v40 = vadd.f32 %v703_v39, %v700_v51  ;;  %v757_v60 = vstv %s2150_s10 }
  0xa5   :  { %s2626_s3 = sld [smem:[#allocation19_spill]]  ;;  %v714_v63 = vmul.f32 %v2054_v34, %v713_v61  ;;  %v749_v61 = vstv %s2142_s23  ;;  %v758_v39 = vmul.f32 %v757_v60, %v1964_v35  ;;  %v760_v24 = vstv %s2156_s21 }
  0xa6   :  { %v644_v30 = vstv %s2625_s14  ;;  %s2188_s30 = sld [smem:[#allocation2 + $0x79]]  ;;  %v2223_v27 = vadd.f32 %v641_v43, %v638_v26  ;;  %v516_v26 = vmul.f32 1.442695, %v515_v8  ;;  %v741_v43 = vstv %s2121_s13 }
  0xa7   :  { %s2193_s8 = sld [smem:[#allocation2 + $0x7a]]  ;;  %v742_v17 = vmul.f32 %v741_v43, %v1954_v12  ;;  %v2269_v8 = vmul.f32 %v2105_v21, %v724_v42  ;;  %v764_v43 = vstv %s2163_s0  ;;  %v750_v42 = vmul.f32 %v749_v61, %v2169_v15 }
  0xa8   :  { %s2627_s25 = sld [smem:[#allocation20_spill]]  ;;  %1357 = vpow2.f32 %v516_v26  ;;  %v2274_v26 = vadd.f32 %v717_v38, %v714_v63  ;;  %v761_v63 = vmul.f32 %v760_v24, %v1996_v46  ;;  %v1356_v38 = vpop.eup %1355  ;;  %v768_v61 = vstv %s2167_s11 }
  0xa9   :  { %s2200_s4 = sld [smem:[#allocation2 + $0x7b]]  ;;  %v743_v51 = vadd.f32 %v742_v17, %v739_v55  ;;  %v765_v55 = vmul.f32 %v764_v43, %v2103_v14  ;;  %v2298_v48 = vmul.f32 %v1356_v38, %v486_v20  ;;  %v2304_v24 = vadd.f32 %v707_v23, %v704_v40 }
  0xaa   :  { %s2206_s22 = sld [smem:[#allocation2 + $0x7c]]  ;;  %v777_v17 = vstv %s2179_s20  ;;  %v553_v20 = vadd.f32 %v552_v18, %v2158_v58  ;;  %v772_v38 = vstv %s2174_s19 }
  0xab   :  { %v659_v54 = vstv %s2626_s3  ;;  %s2211_s18 = sld [smem:[#allocation2 + $0x89]]  ;;  %v747_v47 = vadd.f32 %v746_v1, %v743_v51  ;;  %v778_v60 = vmul.f32 %v777_v17, %v1977_v53  ;;  %v537_v23 = vmul.f32 %v536_v56, %v2298_v48 }
  0xac   :  { %s2217_s28 = sld [smem:[#allocation2 + $0x96]]  ;;  %v660_v62 = vmul.f32 %v659_v54, %v2248_v19  ;;  %v780_v4 = vstv %s2188_s30  ;;  %v762_v54 = vadd.f32 %v761_v63, %v758_v39  ;;  %v753_v63 = vstv %s2145_s27 }
  0xad   :  { %s2227_s5 = sld [smem:[#allocation2 + $0x97]]  ;;  %v781_v51 = vmul.f32 %v780_v4, %v1979_v16  ;;  %v784_v43 = vstv %s2193_s8  ;;  %v751_v40 = vadd.f32 %v750_v42, %v747_v47  ;;  %v769_v4 = vmul.f32 %v768_v61, %v2248_v19 }
  0xae   :  { %s2233_s9 = sld [smem:[#allocation2 + $0x98]]  ;;  %v661_v39 = vadd.f32 %v660_v62, %v2225_v28  ;;  %v766_v17 = vadd.f32 %v765_v55, %v762_v54  ;;  %v785_v18 = vmul.f32 %v784_v43, %v2012_v7  ;;  %v645_v1 = vmul.f32 %v644_v30, %v2298_v48 }
  0xaf   :  { %s2240_s6 = sld [smem:[#allocation2 + $0x99]]  ;;  %v782_v58 = vadd.f32 %v781_v51, %v778_v60  ;;  %v788_v28 = vstv %s2200_s4  ;;  %v538_v30 = vadd.f32 %v537_v23, %v2221_v3  ;;  %v754_v60 = vmul.f32 %v753_v63, %v2298_v48 }
  0xb0   :  { %s2245_s2 = sld [smem:[#allocation2 + $0x9a]]  ;;  %v792_v62 = vstv %s2206_s22  ;;  %v770_v51 = vadd.f32 %v769_v4, %v766_v17  ;;  %v789_v43 = vmul.f32 %v788_v28, %v2021_v10  ;;  %v722_v28 = vadd.f32 %v2260_v44, %v2274_v26 }
  0xb1   :  { %s2253_s29 = sld [smem:[#allocation2 + $0xa7]] }
  0xb2   :  { %s2257_s15 = sld [smem:[#allocation2 + $0xb4]]  ;;  %v800_v5 = vstv %s2217_s28 }
  0xb3   :  { %s2265_s16 = sld [smem:[#allocation2 + $0xb5]]  ;;  %v803_v29 = vstv %s2227_s5  ;;  %v801_v42 = vmul.f32 %v2181_v2, %v800_v5  ;;  %v786_v5 = vadd.f32 %v785_v18, %v782_v58 }
  0xb4   :  { %s2272_s17 = sld [smem:[#allocation2 + $0xb6]]  ;;  %v807_v56 = vstv %s2233_s9  ;;  %v804_v47 = vmul.f32 %v2184_v45, %v803_v29 }
  0xb5   :  { %s2281_s23 = sld [smem:[#allocation2 + $0xb7]]  ;;  %v808_v55 = vmul.f32 %v2203_v36, %v807_v56  ;;  %v811_v54 = vstv %s2240_s6  ;;  %v1358_v61 = vpop.eup %1357 }
  0xb6   :  { %s2628_s10 = sld [smem:[#allocation14_spill]]  ;;  %v2347_v29 = vmul.f32 %v1358_v61, %v518_v32  ;;  %v805_v56 = vadd.f32 %v804_v47, %v801_v42  ;;  %v812_v9 = vmul.f32 %v2229_v57, %v811_v54  ;;  %v815_v50 = vstv %s2245_s2 }
  0xb7   :  { %s2291_s7 = sld [smem:[#allocation2 + $0xb8]]  ;;  %v2632_v32 = vstv %s2627_s25  ;;  %v646_v61 = vadd.f32 %v645_v1, %v2223_v27 }
  0xb8   :  { %s2296_s24 = sld [smem:[#allocation2 + $0xc5]]  ;;  %v822_v41 = vstv %s2257_s15  ;;  %v664_v4 = vmul.f32 %v2632_v32, %v2347_v29  ;;  %v773_v58 = vmul.f32 %v772_v38, %v2347_v29  ;;  %v809_v18 = vadd.f32 %v808_v55, %v805_v56 }
  0xb9   :  { %s2302_s13 = sld [smem:[#allocation2 + $0x4b]]  ;;  %v823_v3 = vmul.f32 %v2054_v34, %v822_v41  ;;  %v825_v23 = vstv %s2265_s16  ;;  %v793_v41 = vmul.f32 %v792_v62, %v2067_v49  ;;  %v790_v55 = vadd.f32 %v789_v43, %v786_v5 }
  0xba   :  { %s2309_s1 = sld [smem:[#allocation2 + $0x4c]]  ;;  %v826_v42 = vmul.f32 %v2069_v22, %v825_v23  ;;  %v829_v47 = vstv %s2272_s17  ;;  %v665_v38 = vadd.f32 %v664_v4, %v661_v39  ;;  %v755_v56 = vadd.f32 %v754_v60, %v751_v40 }
  0xbb   :  { %s2315_s0 = sld [smem:[#allocation2 + $0x4d]]  ;;  %v774_v44 = vadd.f32 %v773_v58, %v770_v51  ;;  %v813_v26 = vadd.f32 %v812_v9, %v809_v18  ;;  %v816_v62 = vmul.f32 %v2076_v52, %v815_v50  ;;  %v830_v1 = vmul.f32 %v2081_v59, %v829_v47 }
  0xbc   :  { %s2321_s11 = sld [smem:[#allocation2 + $0x4e]]  ;;  %v827_v27 = vadd.f32 %v826_v42, %v823_v3  ;;  %v726_v39 = vadd.f32 %v2269_v8, %v722_v28  ;;  %v833_v40 = vstv %s2281_s23  ;;  %v666_v50 = vadd.f32 %v665_v38, %v646_v61 }
  0xbd   :  { %s2326_s27 = sld [smem:[#allocation2 + $0x4f]]  ;;  %v837_v51 = vstv %s2291_s7  ;;  %v817_v5 = vadd.f32 %v816_v62, %v813_v26  ;;  %v819_v32 = vstv %s2253_s29  ;;  %v834_v58 = vmul.f32 %v2105_v21, %v833_v40 }
  0xbe   :  { %s2334_s19 = sld [smem:[#allocation2 + $0x64]]  ;;  %v831_v4 = vadd.f32 %v830_v1, %v827_v27  ;;  %v730_v18 = vadd.f32 %v2277_v25, %v726_v39  ;;  %v797_v28 = vstv %s2211_s18  ;;  %v686_v47 = vadd.f32 %v2235_v11, %v666_v50 }
  0xbf   :  { %s2340_s20 = sld [smem:[#allocation2 + $0x65]]  ;;  %v847_v9 = vstv %s2302_s13 }
  0xc0   :  { %s2630_s14 = sld [smem:[#allocation12_spill]]  ;;  %v850_v60 = vstv %s2309_s1  ;;  %v848_v3 = vmul.f32 %v847_v9, %v1952_v6  ;;  %v835_v11 = vadd.f32 %v834_v58, %v831_v4 }
  0xc1   :  { %s2345_s3 = sld [smem:[#allocation2 + $0x66]]  ;;  %v854_v43 = vstv %s2315_s0  ;;  %v851_v8 = vmul.f32 %v850_v60, %v1954_v12 }
  0xc2   :  { %s2350_s30 = sld [smem:[#allocation2 + $0x67]]  ;;  %v855_v42 = vmul.f32 %v854_v43, %v2060_v31  ;;  %v858_v61 = vstv %s2321_s11 }
  0xc3   :  { %s2356_s8 = sld [smem:[#allocation2 + $0x68]]  ;;  %v859_v27 = vmul.f32 %v858_v61, %v2169_v15  ;;  %v862_v40 = vstv %s2326_s27 }
  0xc4   :  { %s2365_s4 = sld [smem:[#allocation2 + $0x7d]]  ;;  %v866_v25 = vstv %s2334_s19  ;;  %v863_v58 = vmul.f32 %v862_v40, %v2298_v48 }
  0xc5   :  { %s2372_s22 = sld [smem:[#allocation2 + $0x7e]]  ;;  %v867_v62 = vmul.f32 %v866_v25, %v1964_v35 }
  0xc6   :  { %v2631_v63 = vstv %s2630_s14  ;;  %s2375_s25 = sld [smem:[#allocation2 + $0x7f]] }
  0xc7   :  { %v556_v17 = vmul.f32 %v2631_v63, %v2347_v29  ;;  %s2378_s28 = sld [smem:[#allocation2 + $0x80]]  ;;  %v873_v1 = vstv %s2345_s3 }
  0xc8   :  { %s2386_s5 = sld [smem:[#allocation2 + $0x81]]  ;;  %v877_v39 = vstv %s2350_s30  ;;  %v874_v60 = vmul.f32 %v873_v1, %v2103_v14 }
  0xc9   :  { %v557_v54 = vadd.f32 %v556_v17, %v553_v20  ;;  %v2633_v20 = vstv %s2065_s26  ;;  %s2392_s9 = sld [smem:[#allocation2 + $0x8a]]  ;;  %v878_v50 = vmul.f32 %v877_v39, %v2248_v19  ;;  %v881_v43 = vstv %s2356_s8 }
  0xca   :  { %v2383_v63 = vadd.f32 %v2633_v20, %v2304_v24  ;;  %s2396_s26 = sld [smem:[#allocation2 + $0x9b]]  ;;  %v775_v24 = vadd.f32 %v774_v44, %v755_v56  ;;  %v869_v56 = vstv %s2340_s20 }
  0xcb   :  { %v558_v23 = vadd.f32 %v557_v54, %v538_v30  ;;  %v794_v30 = vadd.f32 %v793_v41, %v790_v55  ;;  %s2400_s6 = sld [smem:[#allocation2 + $0x9c]]  ;;  %v852_v41 = vadd.f32 %v851_v8, %v848_v3  ;;  %v841_v54 = vstv %s2296_s24 }
  0xcc   :  { %s2405_s2 = sld [smem:[#allocation2 + $0x9d]]  ;;  %v820_v55 = vadd.f32 %v819_v32, %v817_v5  ;;  %v889_v5 = vstv %s2372_s22 }
  0xcd   :  { %v578_v17 = vadd.f32 %v2126_v33, %v558_v23  ;;  %s2634_s15 = sld [smem:[#allocation13_spill]]  ;;  %v838_v33 = vmul.f32 %v2139_v13, %v837_v51  ;;  %v795_v38 = vadd.f32 %v794_v30, %v775_v24  ;;  %v870_v23 = vmul.f32 %v869_v56, %v1996_v46 }
  0xce   :  { %s2410_s16 = sld [smem:[#allocation2 + $0x9e]]  ;;  %v856_v20 = vadd.f32 %v855_v42, %v852_v41  ;;  %v2636_v30 = vstv %s2019_s12  ;;  %v886_v24 = vstv %s2365_s4  ;;  %v890_v41 = vmul.f32 %v889_v5, %v1979_v16 }
  0xcf   :  { %s2416_s29 = sld [smem:[#allocation2 + $0x9f]]  ;;  %v871_v9 = vadd.f32 %v870_v23, %v867_v62  ;;  %v689_v51 = vadd.f32 %v2636_v30, %v686_v47  ;;  %v798_v3 = vadd.f32 %v797_v28, %v795_v38  ;;  %v839_v8 = vadd.f32 %v838_v33, %v835_v11 }
  0xd0   :  { %s2420_s18 = sld [smem:[#allocation2 + $0xa8]]  ;;  %v887_v32 = vmul.f32 %v886_v24, %v1977_v53  ;;  %v860_v4 = vadd.f32 %v859_v27, %v856_v20  ;;  %v893_v42 = vstv %s2375_s25  ;;  %v882_v33 = vmul.f32 %v881_v43, %v2347_v29 }
  0xd1   :  { %s2426_s17 = sld [smem:[#allocation2 + $0xb9]]  ;;  %v894_v61 = vmul.f32 %v893_v42, %v2012_v7  ;;  %v897_v25 = vstv %s2378_s28  ;;  %v909_v56 = vstv %s2396_s26  ;;  %v2637_v11 = vstv %s2628_s10 }
  0xd2   :  { %s2431_s23 = sld [smem:[#allocation2 + $0xba]]  ;;  %v891_v38 = vadd.f32 %v890_v41, %v887_v32  ;;  %v733_v62 = vadd.f32 %v2637_v11, %v730_v18  ;;  %v2470_v20 = vadd.f32 %v841_v54, %v839_v8  ;;  %v2472_v27 = vmul.f32 %v820_v55, %v798_v3 }
  0xd3   :  { %v2635_v44 = vstv %s2634_s15  ;;  %s2436_s7 = sld [smem:[#allocation2 + $0xbb]]  ;;  %v864_v1 = vadd.f32 %v863_v58, %v860_v4  ;;  %v916_v39 = vstv %s2405_s2  ;;  %v906_v4 = vstv %s2392_s9 }
  0xd4   :  { %v581_v26 = vadd.f32 %v2635_v44, %v578_v17  ;;  %s2443_s24 = sld [smem:[#allocation2 + $0xbc]]  ;;  %v875_v17 = vadd.f32 %v874_v60, %v871_v9  ;;  %v912_v44 = vstv %s2400_s6  ;;  %v895_v40 = vadd.f32 %v894_v61, %v891_v38 }
  0xd5   :  { %s2446_s21 = sld [smem:[#allocation2 + $0xbd]]  ;;  %v913_v23 = vmul.f32 %v2184_v45, %v912_v44  ;;  %v901_v9 = vstv %s2386_s5  ;;  %v920_v54 = vstv %s2410_s16  ;;  %v917_v43 = vmul.f32 %v2203_v36, %v916_v39 }
  0xd6   :  { %s2451_s12 = sld [smem:[#allocation2 + $0xc6]]  ;;  %v626_v28 = vmul.f32 %v2137_v0, %v581_v26  ;;  %v879_v47 = vadd.f32 %v878_v50, %v875_v17  ;;  %v734_v0 = vmul.f32 %v2383_v63, %v689_v51  ;;  %v910_v26 = vmul.f32 %v2181_v2, %v909_v56 }
  0xd7   :  { %s2456_s13 = sld [smem:[#allocation2 + $0x50]]  ;;  %v898_v63 = vmul.f32 %v897_v25, %v2021_v10  ;;  %v931_v55 = vstv %s2426_s17  ;;  %v924_v24 = vstv %s2416_s29  ;;  %v921_v58 = vmul.f32 %v2229_v57, %v920_v54 }
  0xd8   :  { %s2461_s1 = sld [smem:[#allocation2 + $0x51]]  ;;  %v883_v18 = vadd.f32 %v882_v33, %v879_v47  ;;  %v2482_v60 = vmul.f32 %v626_v28, %v2190_v37  ;;  %v934_v50 = vstv %s2431_s23  ;;  %v2489_v30 = vmul.f32 %v734_v0, %v733_v62 }
  0xd9   :  { %s2468_s0 = sld [smem:[#allocation2 + $0x52]]  ;;  %v914_v51 = vadd.f32 %v913_v23, %v910_v26  ;;  %v902_v37 = vmul.f32 %v901_v9, %v2067_v49  ;;  %v932_v5 = vmul.f32 %v2054_v34, %v931_v55  ;;  %v935_v3 = vmul.f32 %v2069_v22, %v934_v50 }
  0xda   :  { %s2475_s10 = sld [smem:[#allocation2 + $0x53]]  ;;  %v938_v8 = vstv %s2436_s7  ;;  %v884_v17 = vadd.f32 %v883_v18, %v864_v1  ;;  %v899_v32 = vadd.f32 %v898_v63, %v895_v40  ;;  %v925_v41 = vmul.f32 %v2076_v52, %v924_v24 }
  0xdb   :  { %s2479_s11 = sld [smem:[#allocation2 + $0x54]]  ;;  %v928_v42 = vstv %s2420_s18  ;;  %v918_v33 = vadd.f32 %v917_v43, %v914_v51  ;;  %v939_v61 = vmul.f32 %v2081_v59, %v938_v8  ;;  %v936_v56 = vadd.f32 %v935_v3, %v932_v5 }
  0xdc   :  { %s2487_s27 = sld [smem:[#allocation2 + $0x69]]  ;;  %v942_v44 = vstv %s2443_s24  ;;  %v903_v0 = vadd.f32 %v902_v37, %v899_v32  ;;  %v946_v26 = vstv %s2446_s21  ;;  %s1427_s24 = smov [#allocation7]  }
  0xdd   :  { %s2493_s19 = sld [smem:[#allocation2 + $0x6a]]  ;;  %v956_v28 = vstv %s2456_s13  ;;  %v922_v40 = vadd.f32 %v921_v58, %v918_v33  ;;  %v943_v63 = vmul.f32 %v2105_v21, %v942_v44  ;;  %v947_v32 = vmul.f32 %v2139_v13, %v946_v26  ;;  %s1071_s21 = sshll.u32 %s1427_s24, 4  ;;  %s1072_s21 = int_to_ptr.vmem [resolvable:$true] %s1071_s21 }
  0xde   :  { %s2499_s20 = sld [smem:[#allocation2 + $0x6b]]  ;;  %v959_v47 = vstv %s2461_s1  ;;  %v957_v38 = vmul.f32 %v956_v28, %v1952_v6  ;;  %p1402_p6 = scmp.lt.s32.totalorder %s1072_s21, %s1072_s21 }
  0xdf   :  { %s2503_s14 = sld [smem:[#allocation2 + $0x6c]]  ;;  %v960_v25 = vmul.f32 %v959_v47, %v1954_v12  ;;  %v963_v11 = vstv %s2468_s0 }
  0xe0   :  { %s2509_s3 = sld [smem:[#allocation2 + $0x6d]]  ;;  %v967_v62 = vstv %s2475_s10  ;;  %v964_v1 = vmul.f32 %v963_v11, %v2060_v31  ;;  %v940_v31 = vadd.f32 %v939_v61, %v936_v56  ;;  %v950_v56 = vstv %s2451_s12  ;;  %s1397_s12 = scalar_lea.vmem %s1072_s21, 128 }
  0xe1   :  { %s2514_s30 = sld [smem:[#allocation2 + $0x82]]  ;;  %v961_v23 = vadd.f32 %v960_v25, %v957_v38  ;;  %v968_v6 = vmul.f32 %v967_v62, %v2169_v15  ;;  %v971_v12 = vstv %s2479_s11  ;;  %p1398_p5 = scmp.ne.s32.totalorder %s1072_s21, %s1397_s12 }
  0xe2   :  { %s2519_s8 = sld [smem:[#allocation2 + $0x83]]  ;;  %v975_v39 = vstv %s2487_s27  ;;  %v972_v43 = vmul.f32 %v971_v12, %v2298_v48  ;;  %p1403_p7 = scmp.lt.s32.totalorder %s1397_s12, %s1397_s12 }
  0xe3   :  { %s2523_s4 = sld [smem:[#allocation2 + $0x84]]  ;;  %v978_v18 = vstv %s2493_s19  ;;  %v965_v9 = vadd.f32 %v964_v1, %v961_v23  ;;  %v976_v54 = vmul.f32 %v975_v39, %v1964_v35 }
  0xe4   :  { %s2529_s22 = sld [smem:[#allocation2 + $0x85]]  ;;  %v979_v55 = vmul.f32 %v978_v18, %v1996_v46  ;;  %v982_v15 = vstv %s2499_s20  ;;  %v904_v46 = vadd.f32 %v903_v0, %v884_v17  ;;  %v926_v17 = vadd.f32 %v925_v41, %v922_v40  ;;  %p1404_p8 = por %p1403_p7, %p1402_p6 }
  0xe5   :  { %s2533_s25 = sld [smem:[#allocation2 + $0x86]]  ;;  %v986_v50 = vstv %s2503_s14  ;;  %v969_v51 = vadd.f32 %v968_v6, %v965_v9  ;;  %v983_v24 = vmul.f32 %v982_v15, %v2103_v14 }
  0xe6   :  { %s2538_s28 = sld [smem:[#allocation2 + $0x8b]]  ;;  %v990_v37 = vstv %s2509_s3  ;;  %v980_v35 = vadd.f32 %v979_v55, %v976_v54  ;;  %v987_v5 = vmul.f32 %v986_v50, %v2248_v19  ;;  %v929_v26 = vadd.f32 %v928_v42, %v926_v17  ;;  %p1405_p9 = pnand %p1404_p8, %p1398_p5 }
  0xe7   :  { %s2543_s5 = sld [smem:[#allocation2 + $0xa0]]  ;;  %v995_v3 = vstv %s2514_s30  ;;  %v991_v28 = vmul.f32 %v990_v37, %v2347_v29  ;;  %v973_v38 = vadd.f32 %v972_v43, %v969_v51  ;;  %v844_v42 = vmul.f32 %v2472_v27, %v2470_v20 }
  0xe8   :  { %v998_v8 = vstv %s2519_s8  ;;  %s2548_s26 = sld [smem:[#allocation2 + $0xa1]]  ;;  %v996_v58 = vmul.f32 %v995_v3, %v1977_v53  ;;  %v984_v14 = vadd.f32 %v983_v24, %v980_v35 }
  0xe9   :  { %v999_v48 = vmul.f32 %v998_v8, %v1979_v16  ;;  %s2553_s6 = sld [smem:[#allocation2 + $0xa2]]  ;;  %v1002_v47 = vstv %s2523_s4  ;;  %v944_v16 = vadd.f32 %v943_v63, %v940_v31 }
  0xea   :  { %v1006_v19 = vstv %s2529_s22  ;;  %s2558_s2 = sld [smem:[#allocation2 + $0xa3]]  ;;  %v1003_v61 = vmul.f32 %v1002_v47, %v2012_v7  ;;  %v988_v25 = vadd.f32 %v987_v5, %v984_v14  ;;  %v907_v7 = vadd.f32 %v906_v4, %v904_v46 }
  0xeb   :  { %v1000_v33 = vadd.f32 %v999_v48, %v996_v58  ;;  %v1007_v53 = vmul.f32 %v1006_v19, %v2021_v10  ;;  %s2562_s15 = sld [smem:[#allocation2 + $0xa4]]  ;;  %v1010_v29 = vstv %s2533_s25  ;;  %v948_v12 = vadd.f32 %v947_v32, %v944_v16 }
  0xec   :  { %s2565_s16 = sld [smem:[#allocation2 + $0xa9]]  ;;  %v1011_v41 = vmul.f32 %v1010_v29, %v2067_v49  ;;  %v992_v10 = vadd.f32 %v991_v28, %v988_v25  ;;  %v952_v55 = vmul.f32 %v929_v26, %v907_v7  ;;  %v1015_v37 = vstv %s2538_s28 }
  0xed   :  { %v1004_v44 = vadd.f32 %v1003_v61, %v1000_v33  ;;  %v1018_v11 = vstv %s2543_s5  ;;  %s1288_s29 = sld [smem:[#allocation2 + $0xbe]]  ;;  %v951_v31 = vadd.f32 %v950_v56, %v948_v12 }
  0xee   :  { %v1019_v62 = vmul.f32 %v2181_v2, %v1018_v11  ;;  %v1021_v0 = vstv %s2548_s26  ;;  %s1289_s17 = sld [smem:[#allocation2 + $0xbf]]  ;;  %v993_v49 = vadd.f32 %v992_v10, %v973_v38 }
  0xef   :  { %v1008_v23 = vadd.f32 %v1007_v53, %v1004_v44  ;;  %v1022_v1 = vmul.f32 %v2184_v45, %v1021_v0  ;;  %v1025_v6 = vstv %s2553_s6  ;;  %s1290_s23 = sld [smem:[#allocation2 + $0xc0]]  ;;  %v736_v45 = vadd.f32 %v2489_v30, %v2482_v60 }
  0xf0   :  { %v1026_v39 = vmul.f32 %v2203_v36, %v1025_v6  ;;  %v1029_v18 = vstv %s2558_s2  ;;  %s1291_s9 = sld [smem:[#allocation2 + $0xc1]]  ;;  %v953_v58 = vmul.f32 %v952_v55, %v951_v31 }
  0xf1   :  { %v1012_v4 = vadd.f32 %v1011_v41, %v1008_v23  ;;  %v1023_v40 = vadd.f32 %v1022_v1, %v1019_v62  ;;  %v1030_v2 = vmul.f32 %v2229_v57, %v1029_v18  ;;  %v1033_v63 = vstv %s2562_s15  ;;  %s1292_s7 = sld [smem:[#allocation2 + $0xc2]] }
  0xf2   :  { %v1034_v54 = vmul.f32 %v2076_v52, %v1033_v63  ;;  %s1293_s18 = sld [smem:[#allocation2 + $0xc7]]  ;;  %v1037_v20 = vstv %s2565_s16  ;;  %v845_v32 = vadd.f32 %v844_v42, %v736_v45 }
  0xf3   :  { %v1027_v9 = vadd.f32 %v1026_v39, %v1023_v40  ;;  %v1040_v36 = vstv %s1288_s29  ;;  %v1013_v57 = vadd.f32 %v1012_v4, %v993_v49 }
  0xf4   :  { %v1041_v15 = vmul.f32 %v2054_v34, %v1040_v36  ;;  %v1043_v50 = vstv %s1289_s17  ;;  %v954_v47 = vadd.f32 %v953_v58, %v845_v32 }
  0xf5   :  { %v1031_v51 = vadd.f32 %v1030_v2, %v1027_v9  ;;  %v1044_v43 = vmul.f32 %v2069_v22, %v1043_v50  ;;  %v1047_v24 = vstv %s1290_s23  ;;  %v1016_v3 = vadd.f32 %v1015_v37, %v1013_v57 }
  0xf6   :  { %v1048_v27 = vmul.f32 %v2081_v59, %v1047_v24  ;;  %v1051_v60 = vstv %s1291_s9 }
  0xf7   :  { %v1035_v30 = vadd.f32 %v1034_v54, %v1031_v51  ;;  %v1045_v35 = vadd.f32 %v1044_v43, %v1041_v15  ;;  %v1052_v52 = vmul.f32 %v2105_v21, %v1051_v60  ;;  %v1055_v5 = vstv %s1292_s7 }
  0xf8   :  { %v1056_v46 = vmul.f32 %v2139_v13, %v1055_v5  ;;  %v1059_v22 = vstv %s1293_s18 }
  0xf9   :  { %v1038_v8 = vadd.f32 %v1037_v20, %v1035_v30  ;;  %v1049_v34 = vadd.f32 %v1048_v27, %v1045_v35 }
  0xfb   :  { %v1053_v48 = vadd.f32 %v1052_v52, %v1049_v34  ;;  %v1061_v28 = vmul.f32 %v1038_v8, %v1016_v3 }
  0xfd   :  { %v1057_v14 = vadd.f32 %v1056_v46, %v1053_v48 }
  0xff   :  { %v1060_v19 = vadd.f32 %v1059_v22, %v1057_v14 }
 0x101   :  { %v1062_v59 = vmul.f32 %v1061_v28, %v1060_v19 }
 0x103   :  { %v1063_v17 = vadd.f32 %v1062_v59, %v954_v47 }
 0x105   :  { %1064 = vst [vmem:[#allocation7] sm:$0xff] %v1063_v17 }
 0x106   :  { %1408 = shalt.err (!%p1405_p9)
}
 0x107   :  { %s2638_s0 = sld [smem:[#allocation21_spill]] }
 0x10d   :  { %1074 = dma.vmem_to_hbm [thread:$0]  %s1072_s21, 128, %s2638_s0, [#allocation4]  }
 0x10e   :  { %1421 = dma.done.wait [#allocation4], 128  }
 0x10f   :  { %1422 = vsyncadd [#allocation4], 4294967168 }
 0x110   :  { %1078 = vsyncpa [#allocation3], 1 }
 0x111   :  { %1079 = vsyncpa [#allocation4], 1 }
 0x112   :  { %1080 = vsyncpa [#allocation5], 1 }

</bundles_post_ra>
